<compile_context>
chip_gen: v5e
topology: v5e:2x2
jax: 0.10.0
libtpu: 0.0.40
codegen_flags: <defaults>
</compile_context>

<pallas_src>
import functools

import jax
import jax.numpy as jnp
import numpy as np
from jax.experimental import pallas as pl
from jax.experimental.pallas import tpu as pltpu

D_PAIR = 32
C = 32
N_HEAD = 4
P_DROP = 0.25  # irrelevant at inference (training=False)
LN_EPS = 1e-5


# ----------------------------- Pallas kernels ----------------------------- #

def _bias_kernel(z_ref, lnw_ref, lnb_ref, wbT_ref, bias_ref, *, n_head):
    """Per (batch, q-tile): LayerNorm + triangle-bias, written as [h, q, k] (lane-dense k=N)."""
    x = z_ref[0]                                   # [N(k), TQ(q), d]  = Z_raw[b, :, q_tile, :]
    xt = jnp.swapaxes(x, 0, 1)                     # [TQ, N, d]  rows of the transposed frame
    mu = jnp.mean(xt, axis=-1, keepdims=True)
    var = jnp.mean((xt - mu) ** 2, axis=-1, keepdims=True)
    y = (xt - mu) * jax.lax.rsqrt(var + LN_EPS)
    y = y * lnw_ref[...][None] + lnb_ref[...][None]          # [TQ, N, d]  (f32)
    for hh in range(n_head):                       # h=4: tiny VPU multiply + lane reduce per head
        w = wbT_ref[hh:hh + 1, :][None]            # [1, 1, d]
        bias_ref[0, hh] = jnp.sum(y * w, axis=-1)  # [TQ, N]  lane-dense store


def _attn_kernel(z_ref, m_ref, bias_ref, lnw_ref, lnb_ref, wf_ref, gb_ref,
                 wo_ref, ob_ref, o_ref, *, n_head, c, tj):
    """Per (batch, j-tile): LN + gated multi-head attention over i + transpose-back + residual."""
    x = z_ref[0]                                   # [N(i), TJ(j), d]  = Z_raw[b, :, j_tile, :]
    n = x.shape[0]
    d = x.shape[2]
    hc = n_head * c
    scaling = c ** -0.5

    # LayerNorm of the transposed-frame rows (recomputed here; no zln HBM intermediate).
    xt = jnp.swapaxes(x, 0, 1)                     # [TJ, N, d]
    mu = jnp.mean(xt, axis=-1, keepdims=True)
    var = jnp.mean((xt - mu) ** 2, axis=-1, keepdims=True)
    y = (xt - mu) * jax.lax.rsqrt(var + LN_EPS)
    y = y * lnw_ref[...][None] + lnb_ref[...][None]          # [TJ, N, d]  (f32)

    # One fused q|k|v|g projection for the whole tile (M = TJ*N, bf16 operands, f32 accumulate).
    proj = jnp.dot(y.reshape(tj * n, d).astype(jnp.bfloat16), wf_ref[...],
                   preferred_element_type=jnp.float32)        # [TJ*N, 4*hc]
    proj = proj.reshape(tj, n, 4 * hc)

    mb = (m_ref[0] - 1.0) * 1e9                    # [TJ, N]  additive mask bias over keys

    rows = []
    for jj in range(tj):                           # static unroll over the j-tile rows
        pr = proj[jj]                              # [N, 4*hc]
        q = pr[:, 0 * hc:1 * hc] * scaling
        k = pr[:, 1 * hc:2 * hc]
        v = pr[:, 2 * hc:3 * hc]
        gate = jax.nn.sigmoid(pr[:, 3 * hc:4 * hc] + gb_ref[...])   # f32 VPU/EUP
        mrow = mb[jj:jj + 1, :]                    # [1, N]
        heads = []
        for hh in range(n_head):                   # static unroll, n_head = 4
            qh = q[:, hh * c:(hh + 1) * c].astype(jnp.bfloat16)
            kh = k[:, hh * c:(hh + 1) * c].astype(jnp.bfloat16)
            vh = v[:, hh * c:(hh + 1) * c].astype(jnp.bfloat16)
            logits = jax.lax.dot_general(           # q @ k^T without an explicit transpose op
                qh, kh, (((1,), (1,)), ((), ())),
                preferred_element_type=jnp.float32)             # [N, N]
            logits = logits + bias_ref[0, hh] + mrow
            logits = logits - jnp.max(logits, axis=-1, keepdims=True)
            e = jnp.exp(logits)
            inv = pl.reciprocal(jnp.sum(e, axis=-1, keepdims=True), approx=True)
            heads.append(jnp.dot((e * inv).astype(jnp.bfloat16), vh,
                                 preferred_element_type=jnp.float32))   # [N, c]
        wa = jnp.concatenate(heads, axis=-1) * gate             # [N, hc] == 'h n d -> n (h d)'
        rows.append(jnp.dot(wa.astype(jnp.bfloat16), wo_ref[...],
                            preferred_element_type=jnp.float32))        # [N, d]

    # Fold bias_dropout_add (eval) + transpose-back into the output path.
    attn = jnp.stack(rows, axis=0)                 # [TJ, N, d]  (transposed frame)
    o_ref[0] = x + jnp.swapaxes(attn, 0, 1) + ob_ref[...][None]         # [N, TJ, d]


# ------------------------------- wrapper ---------------------------------- #

def triangle_attention_ending_node(Z_raw, Z_mask, params, *, tj=None):
    B, N, N2, d = Z_raw.shape
    assert N == N2 and d == D_PAIR
    h, c = N_HEAD, C
    hc = h * c

    if tj is None:
        tj = 8 if N % 8 == 0 else N                # tile of j-rows per grid step
    assert N % tj == 0

    f32 = jnp.float32
    lnw = params["ln_w"].reshape(1, d).astype(f32)
    lnb = params["ln_b"].reshape(1, d).astype(f32)
    gb = params["gating_bias"].reshape(1, hc).astype(f32)
    ob = params["out_bias"].reshape(1, d).astype(f32)
    wbT = params["w_b"].T.astype(f32)                                   # [h, d]
    w_fused = jnp.concatenate([params["w_qkv"], params["w_g"]],
                              axis=1).astype(jnp.bfloat16)              # [d, 4*hc]
    wo = params["w_o"].astype(jnp.bfloat16)                             # [hc, d]
    # Only the tiny mask gets a wrapper transpose (1/32 of Z traffic); Z_raw is never transposed in HBM.
    mt = jnp.swapaxes(Z_mask, 1, 2).astype(f32)                         # [B, j, i]

    cp = pltpu.CompilerParams(
        dimension_semantics=("parallel", "parallel"),
        vmem_limit_bytes=64 * 1024 * 1024)
    grid = (B, N // tj)

    # Pass 1: triangle bias in [B, h, q, k] layout (lane-dense k), no zln intermediate.
    bias = pl.pallas_call(
        functools.partial(_bias_kernel, n_head=h),
        out_shape=jax.ShapeDtypeStruct((B, h, N, N), f32),
        grid=grid,
        in_specs=[
            pl.BlockSpec((1, N, tj, d), lambda b, j: (b, 0, j, 0)),
            pl.BlockSpec((1, d), lambda b, j: (0, 0)),
            pl.BlockSpec((1, d), lambda b, j: (0, 0)),
            pl.BlockSpec((h, d), lambda b, j: (0, 0)),
        ],
        out_specs=pl.BlockSpec((1, h, tj, N), lambda b, j: (b, 0, j, 0)),
        compiler_params=cp,
    )(Z_raw, lnw, lnb, wbT)

    # Pass 2: LN + gated attention + transpose-back + out_bias + residual, TJ rows per step.
    out = pl.pallas_call(
        functools.partial(_attn_kernel, n_head=h, c=c, tj=tj),
        out_shape=jax.ShapeDtypeStruct((B, N, N, d), f32),
        grid=grid,
        in_specs=[
            pl.BlockSpec((1, N, tj, d), lambda b, j: (b, 0, j, 0)),      # Z_raw column slab
            pl.BlockSpec((1, tj, N), lambda b, j: (b, j, 0)),            # transposed mask rows
            pl.BlockSpec((1, h, N, N), lambda b, j: (b, 0, 0, 0)),       # full bias, resident per b
            pl.BlockSpec((1, d), lambda b, j: (0, 0)),
            pl.BlockSpec((1, d), lambda b, j: (0, 0)),
            pl.BlockSpec((d, 4 * hc), lambda b, j: (0, 0)),              # fused [Wq|Wk|Wv|Wg]
            pl.BlockSpec((1, hc), lambda b, j: (0, 0)),
            pl.BlockSpec((hc, d), lambda b, j: (0, 0)),
            pl.BlockSpec((1, d), lambda b, j: (0, 0)),
        ],
        out_specs=pl.BlockSpec((1, N, tj, d), lambda b, j: (b, 0, j, 0)),
        compiler_params=cp,
    )(Z_raw, mt, bias, lnw, lnb, w_fused, gb, wo, ob)
    return out


# --------------------------- pure-JAX reference ---------------------------- #

def reference(Z_raw, Z_mask, params):
    B, N, _, d = Z_raw.shape
    h, c = N_HEAD, C
    hc = h * c
    scaling = c ** -0.5

    Zt = jnp.swapaxes(Z_raw, 1, 2)
    mt = jnp.swapaxes(Z_mask, 1, 2)
    mu = jnp.mean(Zt, -1, keepdims=True)
    var = jnp.mean((Zt - mu) ** 2, -1, keepdims=True)
    Zln = (Zt - mu) / jnp.sqrt(var + LN_EPS) * params["ln_w"] + params["ln_b"]

    b = jnp.einsum("bqkd,dh->bqkh", Zln, params["w_b"])
    qkv = jnp.einsum("bjid,de->bjie", Zln, params["w_qkv"])
    q, k, v = jnp.split(qkv, 3, axis=-1)

    def heads(t):
        return jnp.transpose(t.reshape(B, N, N, h, c), (0, 1, 3, 2, 4))  # [B,j,h,i,c]

    q, k, v = heads(q) * scaling, heads(k), heads(v)
    logits = jnp.einsum("bjhqc,bjhkc->bjhqk", q, k)
    logits = logits + jnp.transpose(b, (0, 3, 1, 2))[:, None]            # [B,1,h,q,k]
    logits = logits + ((mt - 1.0) * 1e9)[:, :, None, None, :]
    w = jax.nn.softmax(logits, -1)
    wa = jnp.einsum("bjhqk,bjhkc->bjhqc", w, v)
    wa = jnp.transpose(wa, (0, 1, 3, 2, 4)).reshape(B, N, N, hc)
    gate = jax.nn.sigmoid(jnp.einsum("bjid,de->bjie", Zln, params["w_g"])
                          + params["gating_bias"])
    wa = wa * gate
    out = jnp.einsum("bjie,ed->bjid", wa, params["w_o"])
    out = jnp.swapaxes(out, 1, 2)
    return Z_raw + out + params["out_bias"]


# --------------------------------- main ------------------------------------ #

if __name__ == "__main__":
    B, N, d, h, c = 2, 16, D_PAIR, N_HEAD, C
    hc = h * c
    key = jax.random.PRNGKey(0)
    ks = jax.random.split(key, 10)

    Z_raw = jax.random.normal(ks[0], (B, N, N, d), dtype=jnp.float32)
    Z_mask = (jax.random.uniform(ks[1], (B, N, N)) > 0.15).astype(jnp.float32)

    params = {
        "ln_w": 1.0 + 0.1 * jax.random.normal(ks[2], (d,), dtype=jnp.float32),
        "ln_b": 0.1 * jax.random.normal(ks[3], (d,), dtype=jnp.float32),
        "w_b": jax.random.normal(ks[4], (d, h), dtype=jnp.float32) / np.sqrt(d),
        "w_qkv": jax.random.normal(ks[5], (d, 3 * hc), dtype=jnp.float32) / np.sqrt(d),
        "w_g": jax.random.normal(ks[6], (d, hc), dtype=jnp.float32) / np.sqrt(d),
        "gating_bias": jnp.ones((hc,), dtype=jnp.float32),
        "w_o": jax.random.normal(ks[7], (hc, d), dtype=jnp.float32) / np.sqrt(hc),
        "out_bias": 0.1 * jax.random.normal(ks[8], (d,), dtype=jnp.float32),
    }

    out = jax.block_until_ready(triangle_attention_ending_node(Z_raw, Z_mask, params))
    ref = jax.block_until_ready(reference(Z_raw, Z_mask, params))

    # Tolerance sized for bf16 MXU operands + approx reciprocal vs. the pure-f32 reference.
    np.testing.assert_allclose(np.asarray(out), np.asarray(ref), rtol=5e-2, atol=1e-1)
    print("KERNEL_OK")
</pallas_src>

<mosaic_0001>
module attributes {stable_mosaic.version = 11 : i64} {
  func.func @_bias_kernel(%arg0: i32, %arg1: i32, %arg2: memref<1x16x8x32xf32, #tpu.memory_space<vmem>>, %arg3: memref<1x32xf32, #tpu.memory_space<vmem>>, %arg4: memref<1x32xf32, #tpu.memory_space<vmem>>, %arg5: memref<4x32xf32, #tpu.memory_space<vmem>>, %arg6: memref<1x4x8x16xf32, #tpu.memory_space<vmem>>) attributes {dimension_semantics = [#tpu.dimension_semantics<parallel>, #tpu.dimension_semantics<parallel>], iteration_bounds = array<i64: 2, 2>, scalar_prefetch = 0 : i64, scratch_operands = 0 : i64, tpu.core_type = #tpu.core_type<tc>, window_params = [{transform_indices = @transform_0, window_bounds = array<i64: 1, 16, 8, 32>}, {pipeline_mode = #tpu.pipeline_mode<synchronous>, transform_indices = @transform_1, window_bounds = array<i64: 1, 32>}, {pipeline_mode = #tpu.pipeline_mode<synchronous>, transform_indices = @transform_2, window_bounds = array<i64: 1, 32>}, {pipeline_mode = #tpu.pipeline_mode<synchronous>, transform_indices = @transform_3, window_bounds = array<i64: 4, 32>}, {transform_indices = @transform_4, window_bounds = array<i64: 1, 4, 8, 16>}]} {
    %c0 = arith.constant 0 : index
    %c0_0 = arith.constant 0 : index
    %c0_1 = arith.constant 0 : index
    %c0_2 = arith.constant 0 : index
    %0 = vector.load %arg2[%c0, %c0_0, %c0_1, %c0_2] : memref<1x16x8x32xf32, #tpu.memory_space<vmem>>, vector<1x16x8x32xf32>
    %1 = vector.shape_cast %0 : vector<1x16x8x32xf32> to vector<16x8x32xf32>
    %2 = tpu.transpose %1, [1, 0, 2] : vector<16x8x32xf32> -> vector<8x16x32xf32>
    %cst = arith.constant dense<0.000000e+00> : vector<8x16xf32>
    %3 = vector.multi_reduction <add>, %2, %cst [2] : vector<8x16x32xf32> to vector<8x16xf32>
    %4 = vector.shape_cast %3 : vector<8x16xf32> to vector<8x16x1xf32>
    %cst_3 = arith.constant 3.200000e+01 : f32
    %5 = vector.broadcast %cst_3 : f32 to vector<8x16x1xf32>
    %6 = arith.divf %4, %5 : vector<8x16x1xf32>
    %7 = vector.broadcast %6 : vector<8x16x1xf32> to vector<8x16x32xf32>
    %8 = arith.subf %2, %7 : vector<8x16x32xf32>
    %9 = arith.mulf %8, %8 : vector<8x16x32xf32>
    %cst_4 = arith.constant dense<0.000000e+00> : vector<8x16xf32>
    %10 = vector.multi_reduction <add>, %9, %cst_4 [2] : vector<8x16x32xf32> to vector<8x16xf32>
    %11 = vector.shape_cast %10 : vector<8x16xf32> to vector<8x16x1xf32>
    %cst_5 = arith.constant 3.200000e+01 : f32
    %12 = vector.broadcast %cst_5 : f32 to vector<8x16x1xf32>
    %13 = arith.divf %11, %12 : vector<8x16x1xf32>
    %14 = vector.broadcast %6 : vector<8x16x1xf32> to vector<8x16x32xf32>
    %15 = arith.subf %2, %14 : vector<8x16x32xf32>
    %cst_6 = arith.constant 9.99999974E-6 : f32
    %16 = vector.broadcast %cst_6 : f32 to vector<8x16x1xf32>
    %17 = arith.addf %13, %16 : vector<8x16x1xf32>
    %18 = math.rsqrt %17 : vector<8x16x1xf32>
    %19 = vector.broadcast %18 : vector<8x16x1xf32> to vector<8x16x32xf32>
    %20 = arith.mulf %15, %19 : vector<8x16x32xf32>
    %c0_7 = arith.constant 0 : index
    %c0_8 = arith.constant 0 : index
    %21 = vector.load %arg3[%c0_7, %c0_8] : memref<1x32xf32, #tpu.memory_space<vmem>>, vector<1x32xf32>
    %22 = vector.shape_cast %21 : vector<1x32xf32> to vector<1x1x32xf32>
    %23 = vector.broadcast %22 : vector<1x1x32xf32> to vector<8x16x32xf32>
    %24 = arith.mulf %20, %23 : vector<8x16x32xf32>
    %c0_9 = arith.constant 0 : index
    %c0_10 = arith.constant 0 : index
    %25 = vector.load %arg4[%c0_9, %c0_10] : memref<1x32xf32, #tpu.memory_space<vmem>>, vector<1x32xf32>
    %26 = vector.shape_cast %25 : vector<1x32xf32> to vector<1x1x32xf32>
    %27 = vector.broadcast %26 : vector<1x1x32xf32> to vector<8x16x32xf32>
    %28 = arith.addf %24, %27 : vector<8x16x32xf32>
    %c0_11 = arith.constant 0 : index
    %c0_12 = arith.constant 0 : index
    %29 = vector.load %arg5[%c0_11, %c0_12] : memref<4x32xf32, #tpu.memory_space<vmem>>, vector<1x32xf32>
    %30 = vector.shape_cast %29 : vector<1x32xf32> to vector<1x1x32xf32>
    %31 = vector.broadcast %30 : vector<1x1x32xf32> to vector<8x16x32xf32>
    %32 = arith.mulf %28, %31 : vector<8x16x32xf32>
    %cst_13 = arith.constant dense<0.000000e+00> : vector<8x16xf32>
    %33 = vector.multi_reduction <add>, %32, %cst_13 [2] : vector<8x16x32xf32> to vector<8x16xf32>
    %c0_14 = arith.constant 0 : index
    %c0_15 = arith.constant 0 : index
    %c0_16 = arith.constant 0 : index
    %c0_17 = arith.constant 0 : index
    %34 = vector.load %arg6[%c0_14, %c0_15, %c0_16, %c0_17] : memref<1x4x8x16xf32, #tpu.memory_space<vmem>>, vector<1x1x8x16xf32>
    %35 = vector.shape_cast %34 : vector<1x1x8x16xf32> to vector<8x16xf32>
    %36 = vector.shape_cast %33 : vector<8x16xf32> to vector<1x1x8x16xf32>
    tpu.vector_store %arg6[%c0_14, %c0_15, %c0_16, %c0_17], %36 {strides = array<i32>} : memref<1x4x8x16xf32, #tpu.memory_space<vmem>>, vector<1x1x8x16xf32>,
    %c1 = arith.constant 1 : index
    %c0_18 = arith.constant 0 : index
    %37 = vector.load %arg5[%c1, %c0_18] : memref<4x32xf32, #tpu.memory_space<vmem>>, vector<1x32xf32>
    %38 = vector.shape_cast %37 : vector<1x32xf32> to vector<1x1x32xf32>
    %39 = vector.broadcast %38 : vector<1x1x32xf32> to vector<8x16x32xf32>
    %40 = arith.mulf %28, %39 : vector<8x16x32xf32>
    %cst_19 = arith.constant dense<0.000000e+00> : vector<8x16xf32>
    %41 = vector.multi_reduction <add>, %40, %cst_19 [2] : vector<8x16x32xf32> to vector<8x16xf32>
    %c0_20 = arith.constant 0 : index
    %c1_21 = arith.constant 1 : index
    %c0_22 = arith.constant 0 : index
    %c0_23 = arith.constant 0 : index
    %42 = vector.load %arg6[%c0_20, %c1_21, %c0_22, %c0_23] : memref<1x4x8x16xf32, #tpu.memory_space<vmem>>, vector<1x1x8x16xf32>
    %43 = vector.shape_cast %42 : vector<1x1x8x16xf32> to vector<8x16xf32>
    %44 = vector.shape_cast %41 : vector<8x16xf32> to vector<1x1x8x16xf32>
    tpu.vector_store %arg6[%c0_20, %c1_21, %c0_22, %c0_23], %44 {strides = array<i32>} : memref<1x4x8x16xf32, #tpu.memory_space<vmem>>, vector<1x1x8x16xf32>,
    %c2 = arith.constant 2 : index
    %c0_24 = arith.constant 0 : index
    %45 = vector.load %arg5[%c2, %c0_24] : memref<4x32xf32, #tpu.memory_space<vmem>>, vector<1x32xf32>
    %46 = vector.shape_cast %45 : vector<1x32xf32> to vector<1x1x32xf32>
    %47 = vector.broadcast %46 : vector<1x1x32xf32> to vector<8x16x32xf32>
    %48 = arith.mulf %28, %47 : vector<8x16x32xf32>
    %cst_25 = arith.constant dense<0.000000e+00> : vector<8x16xf32>
    %49 = vector.multi_reduction <add>, %48, %cst_25 [2] : vector<8x16x32xf32> to vector<8x16xf32>
    %c0_26 = arith.constant 0 : index
    %c2_27 = arith.constant 2 : index
    %c0_28 = arith.constant 0 : index
    %c0_29 = arith.constant 0 : index
    %50 = vector.load %arg6[%c0_26, %c2_27, %c0_28, %c0_29] : memref<1x4x8x16xf32, #tpu.memory_space<vmem>>, vector<1x1x8x16xf32>
    %51 = vector.shape_cast %50 : vector<1x1x8x16xf32> to vector<8x16xf32>
    %52 = vector.shape_cast %49 : vector<8x16xf32> to vector<1x1x8x16xf32>
    tpu.vector_store %arg6[%c0_26, %c2_27, %c0_28, %c0_29], %52 {strides = array<i32>} : memref<1x4x8x16xf32, #tpu.memory_space<vmem>>, vector<1x1x8x16xf32>,
    %c3 = arith.constant 3 : index
    %c0_30 = arith.constant 0 : index
    %53 = vector.load %arg5[%c3, %c0_30] : memref<4x32xf32, #tpu.memory_space<vmem>>, vector<1x32xf32>
    %54 = vector.shape_cast %53 : vector<1x32xf32> to vector<1x1x32xf32>
    %55 = vector.broadcast %54 : vector<1x1x32xf32> to vector<8x16x32xf32>
    %56 = arith.mulf %28, %55 : vector<8x16x32xf32>
    %cst_31 = arith.constant dense<0.000000e+00> : vector<8x16xf32>
    %57 = vector.multi_reduction <add>, %56, %cst_31 [2] : vector<8x16x32xf32> to vector<8x16xf32>
    %c0_32 = arith.constant 0 : index
    %c3_33 = arith.constant 3 : index
    %c0_34 = arith.constant 0 : index
    %c0_35 = arith.constant 0 : index
    %58 = vector.load %arg6[%c0_32, %c3_33, %c0_34, %c0_35] : memref<1x4x8x16xf32, #tpu.memory_space<vmem>>, vector<1x1x8x16xf32>
    %59 = vector.shape_cast %58 : vector<1x1x8x16xf32> to vector<8x16xf32>
    %60 = vector.shape_cast %57 : vector<8x16xf32> to vector<1x1x8x16xf32>
    tpu.vector_store %arg6[%c0_32, %c3_33, %c0_34, %c0_35], %60 {strides = array<i32>} : memref<1x4x8x16xf32, #tpu.memory_space<vmem>>, vector<1x1x8x16xf32>,
    return
  }
  func.func @transform_0(%arg0: i32, %arg1: i32) -> (i32, i32, i32, i32) {
    %c0_i32 = arith.constant 0 : i32
    %c0_i32_0 = arith.constant 0 : i32
    %c0_i32_1 = arith.constant 0 : i32
    return %arg0, %c0_i32, %arg1, %c0_i32_0 : i32, i32, i32, i32
  }
  func.func @transform_1(%arg0: i32, %arg1: i32) -> (i32, i32) {
    %c0_i32 = arith.constant 0 : i32
    %c0_i32_0 = arith.constant 0 : i32
    %c0_i32_1 = arith.constant 0 : i32
    return %c0_i32, %c0_i32_0 : i32, i32
  }
  func.func @transform_2(%arg0: i32, %arg1: i32) -> (i32, i32) {
    %c0_i32 = arith.constant 0 : i32
    %c0_i32_0 = arith.constant 0 : i32
    %c0_i32_1 = arith.constant 0 : i32
    return %c0_i32, %c0_i32_0 : i32, i32
  }
  func.func @transform_3(%arg0: i32, %arg1: i32) -> (i32, i32) {
    %c0_i32 = arith.constant 0 : i32
    %c0_i32_0 = arith.constant 0 : i32
    %c0_i32_1 = arith.constant 0 : i32
    return %c0_i32, %c0_i32_0 : i32, i32
  }
  func.func @transform_4(%arg0: i32, %arg1: i32) -> (i32, i32, i32, i32) {
    %c0_i32 = arith.constant 0 : i32
    %c0_i32_0 = arith.constant 0 : i32
    %c0_i32_1 = arith.constant 0 : i32
    return %arg0, %c0_i32, %arg1, %c0_i32_0 : i32, i32, i32, i32
  }
}

</mosaic_0001>

<bundles_post_ra>
// kernel: tpu_custom_call.1
= control target key start
LH: loop header
LB: loop body
LE: loop exit
PB: predicated region body
PF: predicated region fallthrough
CT: control target
= control target key end

     0   :  { %s3142_s0 = inlined_call_operand.hbm [shape: f32[2,16,16,32], index: 0, kind: input, shape index: {}]   ;;  %s3143_s1 = inlined_call_operand.hbm [shape: f32[1,32], index: 1, kind: input, shape index: {}]   ;;  %s3144_s2 = inlined_call_operand.vmem [shape: f32[1,32], index: 2, kind: input, shape index: {}]   ;;  %s3145_s3 = inlined_call_operand.hbm [shape: f32[4,32], index: 3, kind: input, shape index: {}]   ;;  %s3146_s4 = inlined_call_operand.hbm [shape: f32[2,4,16,16], index: 4, kind: output, shape index: {}]  }
   0x1   :  { %3153 = sst [smem:[#allocation17_spill]] %s3143_s1 }
   0x2   :  { %3154 = sst [smem:[#allocation18_spill]] %s3145_s3 }
   0x3   :  { %9 = vsyncpa [#allocation3], 0 }
   0x4   :  { %11 = vsyncpa [#allocation3 + $0x1], 0 }
   0x5   :  { %12 = vsyncpa [#allocation6], 0 }
   0x6   :  { %13 = vsyncpa [#allocation4], 0 }
   0x7   :  { %15 = vsyncpa [#allocation4 + $0x1], 0  ;;  %s1904_s15 = smov 0   ;;  %s1906_s16 = smov 0  }
   0x8   :  { %s1908_s17 = smov 0   ;;  %s1910_s18 = smov 0  }
   0x9   :  { %s1912_s19 = smov 0   ;;  %s1914_s20 = smov 0  }
   0xa   :  { %s1916_s21 = smov 0   ;;  %s1918_s22 = smov 0  }
   0xb LB: > { %3155 = sst [smem:[#allocation12_spill]] %s1838_s15  ;;  %s1504_s23 = sadd.s32 4294967295, %s1866_s22   ;;  %s1866_s22 = sphi %s1918_s22, %s3204_s22   ;;  %s1862_s21 = sphi %s1916_s21, %s3203_s21   ;;  %s1858_s20 = sphi %s1914_s20, %s3198_s20   ;;  %s1854_s19 = sphi %s1912_s19, %s3202_s19   ;;  %s1850_s18 = sphi %s1910_s18, %s3197_s18   ;;  %s1846_s17 = sphi %s1908_s17, %s3201_s17   ;;  %s1842_s16 = sphi %s1906_s16, %s3200_s16   ;;  %s1838_s15 = sphi %s1904_s15, %s3199_s15  }
   0xc   : > { %3156 = sst [smem:[#allocation13_spill]] %s1858_s20  ;;  %s1505_s24 = sadd.s32 4294967294, %s1866_s22  }
   0xd   : > { %3157 = sst [smem:[#allocation14_spill]] %s1866_s22  ;;  %p49_p0 = scmp.ne.s32.totalorder %s1846_s17, %s1842_s16 }
   0xe   : > { %p50_p1 = scmp.eq.s32.totalorder %s1866_s22, 0  ;;  %p55_p2 = scmp.ne.s32.totalorder %s1842_s16, %s1838_s15 }
   0xf   : > { %p1952_p3 = scmp.eq.s32.totalorder %s1504_s23, 0  ;;  %p144_p4 = scmp.eq.s32.totalorder %s1504_s23, 3 }
  0x10   : > { %p1956_p5 = por %p50_p1, %p49_p0  ;;  %p150_p6 = scmp.eq.s32.totalorder %s1505_s24, 3 }
  0x11   : > { %p1962_p7 = por %p1952_p3, %p55_p2  ;;  %p1966_p8 = por %p144_p4, %p49_p0 }
  0x12   : > { %p1970_p9 = por %p150_p6, %p55_p2  ;;  %p1506_p10 = scmp.ge.s32.totalorder %s1866_s22, 1 }
  0x13   : > { %p157_p11 = scmp.lt.s32.totalorder %s1866_s22, 5  ;;  %s3164_s1 = sld [smem:[#allocation17_spill]] }
  0x14   : > { %s3162_s30 = scalar_select %p1970_p9, 1, 0 }
  0x15   : > { %p1979_p12 = pnand %p1506_p10, %p157_p11  ;;  %s1868_s9 = smov [#allocation5]  }
  0x16   : > { %3163 = sst [smem:[#allocation15_spill]] %s3162_s30  ;;  %s171_s10 = sshll.u32 %s1868_s9, 4  ;;  %s172_s10 = int_to_ptr.vmem [resolvable:$true] %s171_s10 }
  0x17   : > { %p1538_p13 = pneg %p1979_p12  ;;  %p1555_p0 = scmp.lt.s32.totalorder %s1866_s22, 4 }
  0x18   : > { %s3166_s3 = sld [smem:[#allocation18_spill]]  ;;  %s1869_s23 = smov [#allocation7]  }
  0x19   : > { %s169_s7 = sshll.u32 %s3164_s1, 4  ;;  %p1539_p1 = pnand %p1538_p13, %p1952_p3  ;;  %s170_s7 = int_to_ptr.hbm [resolvable:$true] %s169_s7 }
  0x1a   : > { %p1993_p2 = pnand %p1555_p0, %p1956_p5  ;;  %s186_s24 = sshll.u32 %s1869_s23, 4  ;;  %s187_s24 = int_to_ptr.vmem [resolvable:$true] %s186_s24 }
  0x1b   : > { %1541 = dma.hbm_to_vmem [thread:$0]  (!%p1539_p1), %s170_s7, 16, %s172_s10, [#allocation6]  }
  0x1c   : > { %s30_s5 = sadd.s32 1, %s1858_s20  ;;  %s33_s6 = sadd.s32 1, %s1862_s21 }
  0x1d   : > { %p31_p4 = scmp.ge.s32.totalorder %s30_s5, 2  ;;  %s197_s9 = sand.u32 1, %s1846_s17  }
  0x1e   : > { %s184_s13 = sshll.u32 %s3166_s3, 4  ;;  %s1510_s11 = sshll.u32 %s197_s9, 7  ;;  %s185_s13 = int_to_ptr.hbm [resolvable:$true] %s184_s13 }
  0x1f   : > { %1544 = dma.hbm_to_vmem [thread:$0]  (!%p1539_p1), %s185_s13, 64, %s187_s24, [#allocation6]  }
  0x20   : > { %s3206_s5 = smov (%p31_p4, %s30_s5), 0  ;;  %s3208_s6 = smov (!%p31_p4, %s33_s6), %s1862_s21 }
  0x21   : > { %3168 = sst [smem:[#allocation16_spill]] %s3206_s5  ;;  %s38_s27 = ssub.s32 %s1858_s20, %s3206_s5 }
  0x22   : > { %p35_p5 = scmp.ge.s32.totalorder %s3208_s6, 2  ;;  %s1511_s12 = sshll.u32 %s1862_s21, 5 }
  0x23   : > { %s205_s25 = sadd.s32 %s1858_s20, %s1511_s12  ;;  %s201_s23 = scalar_lea.vmem [#allocation2], %s1510_s11 }
  0x24   : > { %s210_s7 = sshll.u32 %s201_s23, 4  ;;  %s3210_s6 = smov (%p35_p5, %s3208_s6), 0  ;;  %s211_s7 = int_to_ptr.vmem [resolvable:$true] %s210_s7 }
  0x25   : > { %s1512_s10 = sshll.u32 %s205_s25, 3  ;;  %s37_s13 = ssub.s32 %s1862_s21, %s3210_s6 }
  0x26   : > { %s207_s3 = scalar_lea.hbm %s3142_s0, %s1512_s10  ;;  %s39_s30 = sor.u32 %s38_s27, %s37_s13 }
  0x27   : > { %s208_s15 = sshll.u32 %s207_s3, 4  ;;  %p40_p6 = scmp.eq.s32.totalorder %s39_s30, 0  ;;  %s209_s15 = int_to_ptr.hbm [resolvable:$true] %s208_s15 }
  0x28   : > { %s3169_s5 = sadd.s32 1, %s1846_s17  ;;  %s198_s11 = scalar_lea.sflag [#allocation3], %s197_s9 }
  0x29   : > { %s2017_s22 = scalar_select %p40_p6, %s1846_s17, %s3169_s5  }
  0x2a   : > { %s1870_s12 = smov 256   ;;  %s1871_s23 = smov 128  }
  0x2b   : > { %s1872_s20 = smov 8   ;;  %222 = sbr.rel (%p1979_p12) target bundleno = 647 (0x287), region = 36 }
  0x2c   : > { %1548 = dma.hbm_to_vmem [thread:$0]  (!%p1993_p2), %s209_s15, 2048, %s211_s7, %s198_s11, %s1870_s12, %s1871_s23, %s1872_s20  }
  0x2d   : > { %s2024_s1 = sand.u32 (!%p1979_p12), 1, %s1842_s16  }
  0x2e   : > { %s1514_s3 = sshll.u32 (!%p1979_p12), %s2024_s1, 7  ;;  %s225_s25 = scalar_lea.sflag (!%p1979_p12), [#allocation3], %s2024_s1 }
  0x2f   : > { %s2028_s30 = scalar_lea.vmem (!%p1979_p12), [#allocation2], %s1514_s3 }
  0x30   : > { %1825 = dma.done.wait (%p1962_p7), %s225_s25, 2048  }
  0x31   : > { %1827 = vsyncadd (%p1962_p7), %s225_s25, 4294965248 }
  0x32   : > { %1829 = dma.done.wait (%p1952_p3), [#allocation6], 80  }
  0x33   : > { %1831 = vsyncadd (%p1952_p3), [#allocation6], 4294967216  ;;  %v1873_v0 = vmov 1983009808   ;;  %v1874_v2 = vmov 1934713408  }
  0x34   : > { %v286_v1 = vunpack.c.l.s4 %v1873_v0  ;;  %v334_v3 = vunpack.c.l.s4 %v1874_v2  ;;  %v2039_v4 = vld [vmem:[%s2028_s30] sm:$0xff]  ;;  %v2042_v5 = vld [vmem:[%s2028_s30 + $0x8] sm:$0xff]  ;;  %v2045_v6 = vld [vmem:[%s2028_s30 + $0x10] sm:$0xff]  ;;  %vm281_vm0 = vcmask 1047556   ;;  %vm505_vm1 = vcmask 261120   ;;  %s1517_s26 = sshll.u32 %s2024_s1, 5 }
  0x35   : > { %v2048_v7 = vld [vmem:[%s2028_s30 + $0x18] sm:$0xff]  ;;  %v2051_v8 = vld [vmem:[%s2028_s30 + $0x20] sm:$0xff]  ;;  %v2054_v9 = vld [vmem:[%s2028_s30 + $0x28] sm:$0xff]  ;;  %v280_v10 = vrot.slane %v2045_v6, 4  ;;  %v295_v16 = vrot.slane %v2042_v5, 4  ;;  %v283_v18 = vrot.slane %v2039_v4, 4 }
  0x36   : > { %v2057_v11 = vunpack.c.0.s8 %v286_v1  ;;  %v2059_v12 = vunpack.c.0.s8 %v334_v3  ;;  %v2062_v13 = vld [vmem:[%s2028_s30 + $0x30] sm:$0xff]  ;;  %v2065_v14 = vld [vmem:[%s2028_s30 + $0x38] sm:$0xff]  ;;  %v293_v15 = vrot.slane %v2048_v7, 4  ;;  %v319_v17 = vrot.slane %v2054_v9, 4  ;;  %v2076_v22 = vld [vmem:[%s2028_s30 + $0x40] sm:$0xff]  ;;  %s2980_s28 = scalar_lea.vmem [#allocation8], %s1517_s26 }
  0x37   : > { %v282_v19 = vsel %vm281_vm0, %v280_v10, %v2039_v4  ;;  %v305_v20 = vrot.slane %v2062_v13, 4  ;;  %v317_v21 = vrot.slane %v2065_v14, 4  ;;  %v2079_v23 = vld [vmem:[%s2028_s30 + $0x50] sm:$0xff]  ;;  %v2082_v24 = vld [vmem:[%s2028_s30 + $0x58] sm:$0xff]  ;;  %v307_v25 = vrot.slane %v2051_v8, 4  ;;  %v2089_v28 = vld [vmem:[%s2028_s30 + $0x48] sm:$0xff] }
  0x38   : > { %v288_v26 = vperm.slane %v282_v19, %v2057_v11  ;;  %v294_v27 = vsel %vm281_vm0, %v293_v15, %v2042_v5  ;;  %v2092_v29 = vld [vmem:[%s2028_s30 + $0x70] sm:$0xff]  ;;  %v393_v30 = vrot.slane %v2079_v23, 4  ;;  %v405_v31 = vrot.slane %v2082_v24, 4  ;;  %v2102_v35 = vld [vmem:[%s2028_s30 + $0x60] sm:$0xff]  ;;  %v2108_v40 = vld [vmem:[%s2028_s30 + $0x78] sm:$0xff]  ;;  %s1522_s8 = sshll.u32 %s1854_s19, 3 }
  0x39   : > { %v300_v32 = vperm.slane %v294_v27, %v2057_v11  ;;  %v306_v33 = vsel %vm281_vm0, %v305_v20, %v2051_v8  ;;  %v318_v34 = vsel %vm281_vm0, %v317_v21, %v2054_v9  ;;  %v395_v36 = vrot.slane %v2076_v22, 4  ;;  %v2117_v48 = vld [vmem:[%s2028_s30 + $0x68] sm:$0xff]  ;;  %s1391_s19 = sadd.s32 %s1850_s18, %s1522_s8  ;;  %s1394_s27 = sshll.u32 %s2980_s28, 4  ;;  %s3088_s27 = int_to_ptr.vmem [resolvable:$true] %s1394_s27 }
  0x3a   : > { %v312_v37 = vperm.slane %v306_v33, %v2057_v11  ;;  %v324_v38 = vperm.slane %v318_v34, %v2057_v11  ;;  %v331_v39 = vrot.slane %v288_v26, 4  ;;  %v394_v41 = vsel %vm281_vm0, %v393_v30, %v2076_v22  ;;  %s1523_s18 = sshll.u32 %s1391_s19, 3  ;;  %s1381_s10 = scalar_lea.sflag [#allocation4], %s2024_s1 }
  0x3b   : > { %v329_v42 = vrot.slane %v300_v32, 4  ;;  %v406_v43 = vsel %vm281_vm0, %v405_v31, %v2089_v28  ;;  %v417_v44 = vrot.slane %v2092_v29, 4  ;;  %v400_v49 = vperm.slane %v394_v41, %v2057_v11  ;;  %s1393_s9 = scalar_lea.hbm %s3146_s4, %s1523_s18  ;;  %s1784_s23 = scalar_lea.hbm %s3146_s4, 128 }
  0x3c   : > { %v332_v45 = vsel %vm281_vm0, %v300_v32, %v331_v39  ;;  %v355_v46 = vrot.slane %v312_v37, 4  ;;  %v353_v47 = vrot.slane %v324_v38, 4  ;;  %v412_v51 = vperm.slane %v406_v43, %v2057_v11  ;;  %s1396_s7 = sshll.u32 %s1393_s9, 4  ;;  %s1397_s7 = int_to_ptr.hbm [resolvable:$true] %s1396_s7 }
  0x3d   : > { %v330_v50 = vsel %vm281_vm0, %v329_v42, %v288_v26  ;;  %v418_v52 = vsel %vm281_vm0, %v417_v44, %v2102_v35  ;;  %v429_v53 = vrot.slane %v2108_v40, 4  ;;  %v2130_v58 = vperm.slane %v332_v45, %v2059_v12  ;;  %s1778_s13 = sshra.s32 %s1397_s7, 4  ;;  %s1779_s13 = int_to_ptr.hbm [resolvable:$true] %s1778_s13 }
  0x3e   : > { %v356_v54 = vsel %vm281_vm0, %v324_v38, %v355_v46  ;;  %v336_v55 = vperm.slane %v330_v50, %v2059_v12  ;;  %v354_v56 = vsel %vm281_vm0, %v353_v47, %v312_v37  ;;  %v424_v57 = vperm.slane %v418_v52, %v2057_v11  ;;  %s1780_s24 = scalar_lea.hbm %s1779_s13, 32  ;;  %p1785_p11 = scmp.lt.s32.totalorder %s1779_s13, %s3146_s4 }
  0x3f   : > { %v2133_v59 = vperm.slane %v356_v54, %v2059_v12  ;;  %v360_v60 = vperm.slane %v354_v56, %v2059_v12  ;;  %v430_v61 = vsel %vm281_vm0, %v429_v53, %v2117_v48  ;;  %v443_v0 = vrot.slane %v400_v49, 4  ;;  %p1781_p3 = scmp.ne.s32.totalorder %s1779_s13, %s1780_s24  ;;  %p1786_p12 = scmp.lt.s32.totalorder %s1784_s23, %s1780_s24 }
  0x40   : > { %v379_v62 = vrot.slane %v336_v55, 4  ;;  %v436_v63 = vperm.slane %v430_v61, %v2057_v11  ;;  %v467_v1 = vrot.slane %v424_v57, 4  ;;  %v441_v4 = vrot.slane %v412_v51, 4 }
  0x41   : > { %v381_v2 = vrot.slane %v2133_v59, 4  ;;  %v377_v3 = vrot.slane %v360_v60, 4  ;;  %v284_v10 = vsel %vm281_vm0, %v2045_v6, %v283_v18  ;;  %v444_v19 = vsel %vm281_vm0, %v412_v51, %v443_v0  ;;  %p1782_p7 = pnand %p1781_p3, %p1966_p8  ;;  %p1787_p13 = por %p1786_p12, %p1785_p11 }
  0x42   : > { %v2143_v15 = vsel %vm281_vm0, %v360_v60, %v379_v62  ;;  %v468_v20 = vsel %vm281_vm0, %v436_v63, %v467_v1  ;;  %v465_v21 = vrot.slane %v436_v63, 4  ;;  %v452_v6 = vperm.slane %v444_v19, %v2059_v12 }
  0x43   : > { %v2149_v26 = vsel %vm281_vm0, %v381_v2, %v2130_v58  ;;  %v512_v27 = vsel %vm505_vm1, %v2143_v15, 0.0  ;;  %v2154_v30 = vsel %vm281_vm0, %v377_v3, %v336_v55  ;;  %v476_v32 = vperm.slane %v468_v20, %v2059_v12  ;;  %p1783_p10 = pneg %p1782_p7 }
  0x44   : > { %v518_v18 = vsel %vm505_vm1, %v2149_v26, 0.0  ;;  %513 = vadd.xlane.f32.xlu1 %v512_v27  ;;  %v506_v31 = vsel %vm505_vm1, %v2154_v30, 0.0  ;;  %v442_v33 = vsel %vm281_vm0, %v441_v4, %v400_v49  ;;  %v407_v34 = vrot.slane %v2089_v28, 4 }
  0x45   : > { %519 = vadd.xlane.f32.xlu2 %v518_v18  ;;  %507 = vadd.xlane.f32.xlu0 %v506_v31  ;;  %v431_v37 = vrot.slane %v2117_v48, 4  ;;  %v448_v38 = vperm.slane %v442_v33, %v2059_v12  ;;  %v466_v39 = vsel %vm281_vm0, %v465_v21, %v424_v57  ;;  %v493_v41 = vrot.slane %v476_v32, 4  ;;  %p1788_p0 = pnand %p1787_p13, %p1783_p10 }
  0x46   : > { %v472_v42 = vperm.slane %v466_v39, %v2059_v12  ;;  %v296_v43 = vsel %vm281_vm0, %v2048_v7, %v295_v16  ;;  %v308_v44 = vsel %vm281_vm0, %v2062_v13, %v307_v25  ;;  %v292_v45 = vperm.slane %v284_v10, %v2057_v11 }
  0x47   : > { %v491_v28 = vrot.slane %v448_v38, 4  ;;  %v304_v46 = vperm.slane %v296_v43, %v2057_v11  ;;  %v320_v47 = vsel %vm281_vm0, %v2065_v14, %v319_v17  ;;  %v2183_v5 = vsel %vm281_vm0, %v493_v41, %v452_v6 }
  0x48   : > { %v489_v48 = vrot.slane %v472_v42, 4  ;;  %v316_v7 = vperm.slane %v308_v44, %v2057_v11  ;;  %v328_v8 = vperm.slane %v320_v47, %v2057_v11  ;;  %v521_v13 = vsel %vm505_vm1, %v2183_v5, 0.0 }
  0x49   : > { %v2190_v16 = vsel %vm281_vm0, %v472_v42, %v491_v28  ;;  %v341_v25 = vrot.slane %v304_v46, 4  ;;  %v383_v9 = vrot.slane %v2130_v58, 4  ;;  %v396_v50 = vsel %vm281_vm0, %v2079_v23, %v395_v36 }
  0x4a   : > { %v515_v14 = vsel %vm505_vm1, %v2190_v16, 0.0  ;;  %v2196_v17 = vsel %vm281_vm0, %v489_v48, %v448_v38  ;;  %v365_v49 = vrot.slane %v328_v8, 4  ;;  %v408_v53 = vsel %vm281_vm0, %v2082_v24, %v407_v34 }
  0x4b   : > { %v509_v51 = vsel %vm505_vm1, %v2196_v17, 0.0  ;;  %v342_v52 = vsel %vm281_vm0, %v341_v25, %v292_v45  ;;  %v404_v55 = vperm.slane %v396_v50, %v2057_v11  ;;  %v416_v56 = vperm.slane %v408_v53, %v2057_v11 }
  0x4c   : > { %516 = vadd.xlane.f32.xlu1 %v515_v14  ;;  %v366_v54 = vsel %vm281_vm0, %v365_v49, %v316_v7  ;;  %v419_v22 = vrot.slane %v2102_v35, 4  ;;  %v348_v23 = vperm.slane %v342_v52, %v2059_v12  ;;  %v432_v57 = vsel %vm281_vm0, %v2108_v40, %v431_v37 }
  0x4d   : > { %522 = vadd.xlane.f32.xlu2 %v521_v13  ;;  %510 = vadd.xlane.f32.xlu0 %v509_v51  ;;  %v372_v36 = vperm.slane %v366_v54, %v2059_v12  ;;  %v495_v58 = vrot.slane %v452_v6, 4  ;;  %v2217_v24 = vsel %vm281_vm0, %v2133_v59, %v383_v9  ;;  %v440_v61 = vperm.slane %v432_v57, %v2057_v11 }
  0x4e   : > { %v420_v60 = vsel %vm281_vm0, %v2092_v29, %v419_v22  ;;  %v453_v35 = vrot.slane %v416_v56, 4  ;;  %v343_v1 = vrot.slane %v292_v45, 4  ;;  %v367_v3 = vrot.slane %v316_v7, 4 }
  0x4f   : > { %v385_v62 = vrot.slane %v372_v36, 4  ;;  %v428_v63 = vperm.slane %v420_v60, %v2057_v11  ;;  %v2224_v0 = vsel %vm281_vm0, %v476_v32, %v495_v58  ;;  %v477_v2 = vrot.slane %v440_v61, 4 }
  0x50   : > { %v454_v40 = vsel %vm281_vm0, %v453_v35, %v404_v55  ;;  %v527_v29 = vsel %vm505_vm1, %v2224_v0, 0.0  ;;  %v524_v11 = vsel %vm505_vm1, %v2217_v24, 0.0  ;;  %v387_v20 = vrot.slane %v348_v23, 4 }
  0x51   : > { %v2228_v59 = vsel %vm281_vm0, %v385_v62, %v348_v23  ;;  %v460_v4 = vperm.slane %v454_v40, %v2059_v12  ;;  %v478_v19 = vsel %vm281_vm0, %v477_v2, %v428_v63  ;;  %v344_v6 = vsel %vm281_vm0, %v304_v46, %v343_v1 }
  0x52   : > { %v530_v10 = vsel %vm505_vm1, %v2228_v59, 0.0  ;;  %v484_v21 = vperm.slane %v478_v19, %v2059_v12  ;;  %v368_v18 = vsel %vm281_vm0, %v328_v8, %v367_v3  ;;  %v479_v31 = vrot.slane %v428_v63, 4 }
  0x53   : > { %v499_v27 = vrot.slane %v460_v4, 4  ;;  %v455_v33 = vrot.slane %v404_v55, 4  ;;  %v352_v34 = vperm.slane %v344_v6, %v2059_v12  ;;  %v2243_v37 = vsel %vm281_vm0, %v372_v36, %v387_v20 }
  0x54   : > { %528 = vadd.xlane.f32.xlu1 %v527_v29  ;;  %v497_v32 = vrot.slane %v484_v21, 4  ;;  %v480_v38 = vsel %vm281_vm0, %v440_v61, %v479_v31  ;;  %v376_v42 = vperm.slane %v368_v18, %v2059_v12  ;;  %v536_v44 = vsel %vm505_vm1, %v2243_v37, 0.0 }
  0x55   : > { %531 = vadd.xlane.f32.xlu2 %v530_v10  ;;  %525 = vadd.xlane.f32.xlu0 %v524_v11  ;;  %v2247_v39 = vsel %vm281_vm0, %v484_v21, %v499_v27  ;;  %v488_v43 = vperm.slane %v480_v38, %v2059_v12  ;;  %v456_v28 = vsel %vm281_vm0, %v416_v56, %v455_v33  ;;  %v391_v48 = vrot.slane %v352_v34, 4 }
  0x56   : > { %v2250_v41 = vsel %vm281_vm0, %v497_v32, %v460_v4  ;;  %v539_v45 = vsel %vm505_vm1, %v2247_v39, 0.0  ;;  %v389_v7 = vrot.slane %v376_v42, 4  ;;  %v464_v8 = vperm.slane %v456_v28, %v2059_v12 }
  0x57   : > { %v533_v46 = vsel %vm505_vm1, %v2250_v41, 0.0  ;;  %v501_v47 = vrot.slane %v488_v43, 4  ;;  %v2266_v25 = vsel %vm281_vm0, %v376_v42, %v391_v48  ;;  %v1875_v53 = vmov 32.0  }
  0x58   : > { %v2269_v9 = vsel %vm281_vm0, %v389_v7, %v352_v34  ;;  %v548_v49 = vsel %vm505_vm1, %v2266_v25, 0.0  ;;  %v503_v50 = vrot.slane %v464_v8, 4  ;;  %1640 = vrcp.f32 %v1875_v53 }
  0x59   : > { %v2263_v13 = vsel %vm281_vm0, %v501_v47, %v464_v8  ;;  %v542_v12 = vsel %vm505_vm1, %v2269_v9, 0.0 }
  0x5a   : > { %v545_v14 = vsel %vm505_vm1, %v2263_v13, 0.0  ;;  %v2278_v51 = vsel %vm281_vm0, %v488_v43, %v503_v50 }
  0x5b   : > { %v551_v52 = vsel %vm505_vm1, %v2278_v51, 0.0 }
  0x5c   : > { %537 = vadd.xlane.f32.xlu1 %v536_v44 }
  0x5d   : > { %540 = vadd.xlane.f32.xlu2 %v539_v45  ;;  %534 = vadd.xlane.f32.xlu0 %v533_v46 }
  0x5e   : > { %v1641_v54 = vpop.eup %1640 }
  0x5f   : > { %v555_v55 = vmul.f32 32.0, %v1641_v54  ;;  %vm559_vm2 = vweird.f32 %v1641_v54 }
  0x61   : > { %v556_v56 = vsub.f32 1.0, %v555_v55 }
  0x63   : > { %v557_v22 = vmul.f32 %v1641_v54, %v556_v56 }
  0x64   : > { %546 = vadd.xlane.f32.xlu1 %v545_v14 }
  0x65   : > { %549 = vadd.xlane.f32.xlu2 %v548_v49  ;;  %543 = vadd.xlane.f32.xlu0 %v542_v12  ;;  %v558_v23 = vadd.f32 %v1641_v54, %v557_v22 }
  0x67   : > { %v2282_v36 = vsel %vm559_vm2, %v1641_v54, %v558_v23 }
  0x6d   : > { %552 = vadd.xlane.f32.xlu0 %v551_v52 }
  0xb7   : > { %v514_v57 = vpop.xlane.xlu1 %513 }
  0xb8   : > { %v520_v58 = vpop.xlane.xlu2 %519  ;;  %v563_v60 = vmul.f32 %v2282_v36, %v514_v57  ;;  %v508_v61 = vpop.xlane.xlu0 %507 }
  0xb9   : > { %v561_v35 = vmul.f32 %v2282_v36, %v508_v61  ;;  %v565_v27 = vmul.f32 %v2282_v36, %v520_v58 }
  0xba   : > { %v2287_v62 = vsub.f32 %v2143_v15, %v563_v60 }
  0xbb   : > { %v2290_v63 = vsub.f32 %v2154_v30, %v561_v35 }
  0xbc   : > { %v595_v1 = vmul.f32 %v2287_v62, %v2287_v62 }
  0xbd   : > { %v593_v40 = vmul.f32 %v2290_v63, %v2290_v63 }
  0xbe   : > { %v615_v2 = vsel %vm505_vm1, %v595_v1, 0.0 }
  0xbf   : > { %v517_v3 = vpop.xlane.xlu1 %516  ;;  %616 = vadd.xlane.f32.xlu0 %v615_v2  ;;  %v609_v4 = vsel %vm505_vm1, %v593_v40, 0.0 }
  0xc0   : > { %v523_v29 = vpop.xlane.xlu2 %522  ;;  %v564_v10 = vmul.f32 %v2282_v36, %v517_v3  ;;  %610 = vadd.xlane.f32.xlu1 %v609_v4  ;;  %v511_v15 = vpop.xlane.xlu0 %510 }
  0xc1   : > { %v566_v30 = vmul.f32 %v2282_v36, %v523_v29  ;;  %v562_v11 = vmul.f32 %v2282_v36, %v511_v15 }
  0xc2   : > { %v2302_v19 = vsub.f32 %v2190_v16, %v564_v10 }
  0xc3   : > { %v2305_v20 = vsub.f32 %v2183_v5, %v566_v30  ;;  %v2308_v21 = vsub.f32 %v2196_v17, %v562_v11  ;;  %v2321_v17 = vsub.f32 %v2149_v26, %v565_v27 }
  0xc4   : > { %v596_v6 = vmul.f32 %v2302_v19, %v2302_v19 }
  0xc5   : > { %v598_v18 = vmul.f32 %v2305_v20, %v2305_v20  ;;  %v594_v31 = vmul.f32 %v2308_v21, %v2308_v21  ;;  %v597_v26 = vmul.f32 %v2321_v17, %v2321_v17 }
  0xc6   : > { %v618_v16 = vsel %vm505_vm1, %v596_v6, 0.0 }
  0xc7   : > { %v624_v32 = vsel %vm505_vm1, %v598_v18, 0.0  ;;  %v612_v5 = vsel %vm505_vm1, %v594_v31, 0.0  ;;  %v529_v33 = vpop.xlane.xlu1 %528 }
  0xc8   : > { %v532_v34 = vpop.xlane.xlu2 %531  ;;  %625 = vadd.xlane.f32.xlu0 %v624_v32  ;;  %619 = vadd.xlane.f32.xlu1 %v618_v16  ;;  %v526_v38 = vpop.xlane.xlu0 %525  ;;  %v568_v44 = vmul.f32 %v2282_v36, %v529_v33 }
  0xc9   : > { %v569_v42 = vmul.f32 %v2282_v36, %v532_v34  ;;  %613 = vadd.xlane.f32.xlu2 %v612_v5  ;;  %v567_v43 = vmul.f32 %v2282_v36, %v526_v38 }
  0xca   : > { %v2339_v48 = vsub.f32 %v2224_v0, %v568_v44 }
  0xcb   : > { %v2327_v28 = vsub.f32 %v2228_v59, %v569_v42  ;;  %v2330_v45 = vsub.f32 %v2217_v24, %v567_v43  ;;  %v621_v24 = vsel %vm505_vm1, %v597_v26, 0.0 }
  0xcc   : > { %v600_v0 = vmul.f32 %v2339_v48, %v2339_v48 }
  0xcd   : > { %v601_v46 = vmul.f32 %v2327_v28, %v2327_v28  ;;  %v599_v47 = vmul.f32 %v2330_v45, %v2330_v45 }
  0xce   : > { %v630_v23 = vsel %vm505_vm1, %v600_v0, 0.0 }
  0xcf   : > { %v633_v7 = vsel %vm505_vm1, %v601_v46, 0.0  ;;  %v627_v59 = vsel %vm505_vm1, %v599_v47, 0.0  ;;  %v538_v8 = vpop.xlane.xlu1 %537 }
  0xd0   : > { %v541_v14 = vpop.xlane.xlu2 %540  ;;  %634 = vadd.xlane.f32.xlu0 %v633_v7  ;;  %628 = vadd.xlane.f32.xlu1 %v627_v59  ;;  %v535_v49 = vpop.xlane.xlu0 %534  ;;  %v571_v52 = vmul.f32 %v2282_v36, %v538_v8 }
  0xd1   : > { %v572_v12 = vmul.f32 %v2282_v36, %v541_v14  ;;  %622 = vadd.xlane.f32.xlu2 %v621_v24  ;;  %v570_v50 = vmul.f32 %v2282_v36, %v535_v49 }
  0xd2   : > { %v2360_v22 = vsub.f32 %v2243_v37, %v571_v52 }
  0xd3   : > { %v2350_v53 = vsub.f32 %v2247_v39, %v572_v12  ;;  %v2353_v54 = vsub.f32 %v2250_v41, %v570_v50 }
  0xd4   : > { %v603_v37 = vmul.f32 %v2360_v22, %v2360_v22 }
  0xd5   : > { %v604_v55 = vmul.f32 %v2350_v53, %v2350_v53  ;;  %v602_v56 = vmul.f32 %v2353_v54, %v2353_v54 }
  0xd6   : > { %v639_v10 = vsel %vm505_vm1, %v603_v37, 0.0 }
  0xd7   : > { %v642_v57 = vsel %vm505_vm1, %v604_v55, 0.0  ;;  %v636_v58 = vsel %vm505_vm1, %v602_v56, 0.0  ;;  %v547_v39 = vpop.xlane.xlu1 %546 }
  0xd8   : > { %v550_v60 = vpop.xlane.xlu2 %549  ;;  %643 = vadd.xlane.f32.xlu0 %v642_v57  ;;  %637 = vadd.xlane.f32.xlu1 %v636_v58  ;;  %v544_v41 = vpop.xlane.xlu0 %543  ;;  %v574_v1 = vmul.f32 %v2282_v36, %v547_v39 }
  0xd9   : > { %v575_v61 = vmul.f32 %v2282_v36, %v550_v60  ;;  %631 = vadd.xlane.f32.xlu2 %v630_v23  ;;  %v573_v35 = vmul.f32 %v2282_v36, %v544_v41 }
  0xda   : > { %v2381_v29 = vsub.f32 %v2263_v13, %v574_v1 }
  0xdb   : > { %v2371_v40 = vsub.f32 %v2266_v25, %v575_v61  ;;  %v2374_v2 = vsub.f32 %v2269_v9, %v573_v35 }
  0xdc   : > { %v606_v11 = vmul.f32 %v2381_v29, %v2381_v29 }
  0xdd   : > { %v607_v3 = vmul.f32 %v2371_v40, %v2371_v40  ;;  %v605_v4 = vmul.f32 %v2374_v2, %v2374_v2 }
  0xde   : > { %v648_v6 = vsel %vm505_vm1, %v606_v11, 0.0 }
  0xdf   : > { %v651_v15 = vsel %vm505_vm1, %v607_v3, 0.0  ;;  %v645_v30 = vsel %vm505_vm1, %v605_v4, 0.0 }
  0xe0   : > { %652 = vadd.xlane.f32.xlu0 %v651_v15  ;;  %646 = vadd.xlane.f32.xlu1 %v645_v30  ;;  %v553_v25 = vpop.xlane.xlu0 %552 }
  0xe1   : > { %640 = vadd.xlane.f32.xlu2 %v639_v10  ;;  %v576_v9 = vmul.f32 %v2282_v36, %v553_v25 }
  0xe3   : > { %v2390_v27 = vsub.f32 %v2278_v51, %v576_v9 }
  0xe5   : > { %v608_v13 = vmul.f32 %v2390_v27, %v2390_v27 }
  0xe7   : > { %v654_v18 = vsel %vm505_vm1, %v608_v13, 0.0 }
  0xe8   : > { %655 = vadd.xlane.f32.xlu1 %v654_v18 }
  0xe9   : > { %649 = vadd.xlane.f32.xlu2 %v648_v6 }
 0x132   : > { %v617_v31 = vpop.xlane.xlu0 %616 }
 0x133   : > { %v611_v16 = vpop.xlane.xlu1 %610  ;;  %v659_v32 = vmul.f32 %v617_v31, %v2282_v36 }
 0x134   : > { %v657_v5 = vmul.f32 %v611_v16, %v2282_v36 }
 0x135   : > { %v675_v33 = vadd.f32 1e-05, %v659_v32 }
 0x136   : > { %v673_v34 = vadd.f32 1e-05, %v657_v5 }
 0x137   : > { %1642 = vrsqrt.f32 %v675_v33  ;;  %vm715_vm7 = vweird.f32 %v675_v33 }
 0x138   : > { %1644 = vrsqrt.f32 %v673_v34  ;;  %vm695_vm5 = vweird.f32 %v673_v34 }
 0x13b   : > { %v620_v51 = vpop.xlane.xlu1 %619  ;;  %v626_v38 = vpop.xlane.xlu0 %625 }
 0x13c   : > { %v660_v42 = vmul.f32 %v620_v51, %v2282_v36  ;;  %v614_v43 = vpop.xlane.xlu2 %613  ;;  %v662_v44 = vmul.f32 %v626_v38, %v2282_v36 }
 0x13d   : > { %v1643_v26 = vpop.eup %1642  ;;  %v658_v46 = vmul.f32 %v614_v43, %v2282_v36 }
 0x13e   : > { %v1645_v47 = vpop.eup %1644  ;;  %v710_v7 = vmul.f32 %v1643_v26, %v675_v33  ;;  %v2401_v59 = vadd.f32 1e-05, %v660_v42  ;;  %v2403_v8 = vadd.f32 1e-05, %v662_v44  ;;  %vm716_vm4 = vweird.f32 %v1643_v26  ;;  %v2448_v33 = vld [vmem:[#allocation5] ss:$0 sm:$0xff] }
 0x13f   : > { %v690_v14 = vmul.f32 %v1645_v47, %v673_v34  ;;  %v2405_v24 = vadd.f32 1e-05, %v658_v46  ;;  %vm696_vm3 = vweird.f32 %v1645_v47  ;;  %vm2436_vm8 = vmor %vm715_vm7, %vm716_vm4 }
 0x140   : > { %v711_v49 = vmul.f32 %v1643_v26, %v710_v7  ;;  %1646 = vrsqrt.f32 %v2401_v59  ;;  %vm2425_vm6 = vmor %vm695_vm5, %vm696_vm3  ;;  %vm725_vm9 = vweird.f32 %v2401_v59  ;;  %vm745_vm11 = vweird.f32 %v2403_v8 }
 0x141   : > { %v691_v12 = vmul.f32 %v1645_v47, %v690_v14  ;;  %1648 = vrsqrt.f32 %v2405_v24  ;;  %vm705_vm13 = vweird.f32 %v2405_v24 }
 0x142   : > { %v712_v50 = vmul.f32 0.5, %v711_v49  ;;  %1650 = vrsqrt.f32 %v2403_v8 }
 0x143   : > { %v692_v52 = vmul.f32 0.5, %v691_v12  ;;  %v629_v0 = vpop.xlane.xlu1 %628  ;;  %v635_v55 = vpop.xlane.xlu0 %634 }
 0x144   : > { %v713_v56 = vsub.f32 1.5, %v712_v50  ;;  %v623_v23 = vpop.xlane.xlu2 %622  ;;  %v663_v57 = vmul.f32 %v629_v0, %v2282_v36  ;;  %v665_v58 = vmul.f32 %v635_v55, %v2282_v36 }
 0x145   : > { %v693_v39 = vsub.f32 1.5, %v692_v52  ;;  %v661_v60 = vmul.f32 %v623_v23, %v2282_v36 }
 0x146   : > { %v2413_v41 = vpop.eup %1646  ;;  %v714_v61 = vmul.f32 %v1643_v26, %v713_v56  ;;  %v2415_v35 = vadd.f32 1e-05, %v663_v57  ;;  %v2432_v25 = vadd.f32 1e-05, %v665_v58  ;;  %v2474_v56 = vld [vmem:[%s3144_s2] ss:$0 sm:$0xff] }
 0x147   : > { %v2417_v1 = vpop.eup %1648  ;;  %v694_v37 = vmul.f32 %v1645_v47, %v693_v39  ;;  %v720_v3 = vmul.f32 %v2413_v41, %v2401_v59  ;;  %v2421_v4 = vadd.f32 1e-05, %v661_v60  ;;  %vm726_vm10 = vweird.f32 %v2413_v41 }
 0x148   : > { %v2423_v10 = vpop.eup %1650  ;;  %v700_v30 = vmul.f32 %v2417_v1, %v2405_v24  ;;  %1652 = vrsqrt.f32 %v2415_v35  ;;  %v718_v18 = vsel %vm2436_vm8, %v1643_v26, %v714_v61  ;;  %vm706_vm12 = vweird.f32 %v2417_v1  ;;  %vm2489_vm15 = vmor %vm725_vm9, %vm726_vm10 }
 0x149   : > { %v698_v9 = vsel %vm2425_vm6, %v1645_v47, %v694_v37  ;;  %v721_v13 = vmul.f32 %v2413_v41, %v720_v3  ;;  %v740_v6 = vmul.f32 %v2423_v10, %v2403_v8  ;;  %1654 = vrsqrt.f32 %v2421_v4  ;;  %vm2501_vm0 = vmor %vm705_vm13, %vm706_vm12 }
 0x14a   : > { %v701_v31 = vmul.f32 %v2417_v1, %v700_v30  ;;  %v849_v34 = vmul.f32 %v698_v9, %v2290_v63  ;;  %1656 = vrsqrt.f32 %v2432_v25  ;;  %v851_v43 = vmul.f32 %v718_v18, %v2287_v62 }
 0x14b   : > { %v722_v16 = vmul.f32 0.5, %v721_v13  ;;  %v741_v32 = vmul.f32 %v2423_v10, %v740_v6  ;;  %v638_v5 = vpop.xlane.xlu1 %637  ;;  %v644_v42 = vpop.xlane.xlu0 %643  ;;  %vm746_vm14 = vweird.f32 %v2423_v10  ;;  %vm735_vm2 = vweird.f32 %v2421_v4  ;;  %v2518_v13 = vld [vmem:[#allocation7] ss:$0 sm:$0xff] }
 0x14c   : > { %v702_v51 = vmul.f32 0.5, %v701_v31  ;;  %v632_v38 = vpop.xlane.xlu2 %631  ;;  %v666_v63 = vmul.f32 %v638_v5, %v2282_v36  ;;  %v668_v62 = vmul.f32 %v644_v42, %v2282_v36  ;;  %v869_v52 = vmul.f32 %v2448_v33, %v849_v34  ;;  %vm2524_vm4 = vmor %vm745_vm11, %vm746_vm14 }
 0x14d   : > { %v723_v44 = vsub.f32 1.5, %v722_v16  ;;  %v742_v26 = vmul.f32 0.5, %v741_v32  ;;  %v664_v46 = vmul.f32 %v632_v38, %v2282_v36  ;;  %v2477_v23 = vmul.f32 %v2448_v33, %v851_v43 }
 0x14e   : > { %v2455_v47 = vpop.eup %1652  ;;  %v703_v7 = vsub.f32 1.5, %v702_v51  ;;  %v2496_v24 = vadd.f32 1e-05, %v666_v63  ;;  %v2509_v30 = vadd.f32 1e-05, %v668_v62  ;;  %vm755_vm3 = vweird.f32 %v2415_v35 }
 0x14f   : > { %v724_v14 = vmul.f32 %v2413_v41, %v723_v44  ;;  %v743_v49 = vsub.f32 1.5, %v742_v26  ;;  %v750_v12 = vmul.f32 %v2455_v47, %v2415_v35  ;;  %v2464_v50 = vpop.eup %1654  ;;  %v2469_v55 = vadd.f32 1e-05, %v664_v46 }
 0x150   : > { %v704_v0 = vmul.f32 %v2417_v1, %v703_v7  ;;  %v730_v57 = vmul.f32 %v2464_v50, %v2421_v4  ;;  %v2483_v58 = vpop.eup %1656  ;;  %vm736_vm5 = vweird.f32 %v2464_v50  ;;  %vm756_vm6 = vweird.f32 %v2455_v47 }
 0x151   : > { %v744_v60 = vmul.f32 %v2423_v10, %v743_v49  ;;  %v751_v61 = vmul.f32 %v2455_v47, %v750_v12  ;;  %1658 = vrsqrt.f32 %v2469_v55  ;;  %v728_v37 = vsel %vm2489_vm15, %v2413_v41, %v724_v14  ;;  %vm2559_vm9 = vmor %vm755_vm3, %vm756_vm6 }
 0x152   : > { %v731_v59 = vmul.f32 %v2464_v50, %v730_v57  ;;  %v770_v15 = vmul.f32 %v2483_v58, %v2432_v25  ;;  %v708_v9 = vsel %vm2501_vm0, %v2417_v1, %v704_v0  ;;  %v2516_v41 = vadd.f32 %v2474_v56, %v869_v52  ;;  %vm2574_vm10 = vmor %vm735_vm2, %vm736_vm5 }
 0x153   : > { %v752_v11 = vmul.f32 0.5, %v751_v61  ;;  %v647_v16 = vpop.xlane.xlu1 %646  ;;  %v852_v32 = vmul.f32 %v728_v37, %v2302_v19  ;;  %v748_v5 = vsel %vm2524_vm4, %v2423_v10, %v744_v60  ;;  %1660 = vrsqrt.f32 %v2496_v24 }
 0x154   : > { %v732_v18 = vmul.f32 0.5, %v731_v59  ;;  %v771_v1 = vmul.f32 %v2483_v58, %v770_v15  ;;  %v641_v31 = vpop.xlane.xlu2 %640  ;;  %v850_v34 = vmul.f32 %v708_v9, %v2308_v21  ;;  %1662 = vrsqrt.f32 %v2509_v30  ;;  %v653_v59 = vpop.xlane.xlu0 %652 }
 0x155   : > { %v753_v8 = vsub.f32 1.5, %v752_v11  ;;  %v907_v19 = vmul.f32 %v2518_v13, %v2516_v41  ;;  %v667_v44 = vmul.f32 %v641_v31, %v2282_v36  ;;  %v669_v10 = vmul.f32 %v647_v16, %v2282_v36 }
 0x156   : > { %v733_v51 = vsub.f32 1.5, %v732_v18  ;;  %v772_v38 = vmul.f32 0.5, %v771_v1  ;;  %v854_v26 = vmul.f32 %v748_v5, %v2305_v20  ;;  %vm775_vm7 = vweird.f32 %v2432_v25 }
 0x157   : > { %v2538_v42 = vpop.eup %1658  ;;  %v754_v43 = vmul.f32 %v2455_v47, %v753_v8  ;;  %vm776_vm8 = vweird.f32 %v2483_v58  ;;  %v923_v63 = vsel %vm505_vm1, %v907_v19, 0.0  ;;  %v2552_v14 = vadd.f32 1e-05, %v667_v44 }
 0x158   : > { %v734_v46 = vmul.f32 %v2464_v50, %v733_v51  ;;  %v773_v21 = vsub.f32 1.5, %v772_v38  ;;  %v760_v7 = vmul.f32 %v2538_v42, %v2469_v55  ;;  %v872_v49 = vmul.f32 %v2448_v33, %v852_v32  ;;  %924 = vadd.xlane.f32.xlu2 %v923_v63  ;;  %vm2595_vm12 = vmor %vm775_vm7, %vm776_vm8 }
 0x159   : > { %v2565_v52 = vadd.f32 1e-05, %v669_v10  ;;  %v2567_v0 = vpop.eup %1660  ;;  %v870_v57 = vmul.f32 %v2448_v33, %v850_v34  ;;  %v758_v39 = vsel %vm2559_vm9, %v2455_v47, %v754_v43  ;;  %vm765_vm11 = vweird.f32 %v2469_v55 }
 0x15a   : > { %v774_v12 = vmul.f32 %v2483_v58, %v773_v21  ;;  %v761_v62 = vmul.f32 %v2538_v42, %v760_v7  ;;  %1664 = vrsqrt.f32 %v2552_v14  ;;  %v2583_v60 = vpop.eup %1662  ;;  %v2586_v61 = vmul.f32 %v2448_v33, %v854_v26 }
 0x15b   : > { %v738_v4 = vsel %vm2574_vm10, %v2464_v50, %v734_v46  ;;  %v780_v3 = vmul.f32 %v2567_v0, %v2496_v24  ;;  %vm766_vm13 = vweird.f32 %v2538_v42  ;;  %vm785_vm14 = vweird.f32 %v2496_v24 }
 0x15c   : > { %v762_v47 = vmul.f32 0.5, %v761_v62  ;;  %v778_v15 = vsel %vm2595_vm12, %v2483_v58, %v774_v12  ;;  %v800_v25 = vmul.f32 %v2583_v60, %v2509_v30  ;;  %v855_v50 = vmul.f32 %v758_v39, %v2330_v45  ;;  %v650_v5 = vpop.xlane.xlu2 %649  ;;  %vm2630_vm0 = vmor %vm765_vm11, %vm766_vm13  ;;  %v656_v62 = vpop.xlane.xlu1 %655 }
 0x15d   : > { %v781_v11 = vmul.f32 %v2567_v0, %v780_v3  ;;  %vm805_vm15 = vweird.f32 %v2509_v30  ;;  %1666 = vrsqrt.f32 %v2565_v52  ;;  %v853_v6 = vmul.f32 %v738_v4, %v2321_v17 }
 0x15e   : > { %v763_v9 = vsub.f32 1.5, %v762_v47  ;;  %v801_v58 = vmul.f32 %v2583_v60, %v800_v25  ;;  %v2616_v18 = vadd.f32 %v2474_v56, %v2477_v23  ;;  %v671_v1 = vmul.f32 %v653_v59, %v2282_v36 }
 0x15f   : > { %v857_v31 = vmul.f32 %v778_v15, %v2327_v28  ;;  %v782_v16 = vmul.f32 0.5, %v781_v11  ;;  %v2622_v32 = vadd.f32 %v2474_v56, %v872_v49  ;;  %vm786_vm2 = vweird.f32 %v2567_v0 }
 0x160   : > { %v764_v45 = vmul.f32 %v2538_v42, %v763_v9  ;;  %v2624_v8 = vpop.eup %1664  ;;  %v802_v28 = vmul.f32 0.5, %v801_v58  ;;  %v909_v23 = vmul.f32 %v2518_v13, %v2616_v18  ;;  %v2637_v34 = vadd.f32 1e-05, %v671_v1  ;;  %vm2661_vm4 = vmor %vm785_vm14, %vm786_vm2 }
 0x161   : > { %v783_v38 = vsub.f32 1.5, %v782_v16  ;;  %v790_v55 = vmul.f32 %v2624_v8, %v2552_v14  ;;  %vm795_vm3 = vweird.f32 %v2552_v14  ;;  %v2646_v43 = vadd.f32 %v2474_v56, %v870_v57 }
 0x162   : > { %v768_v51 = vsel %vm2630_vm0, %v2538_v42, %v764_v45  ;;  %v803_v19 = vsub.f32 1.5, %v802_v28  ;;  %v929_v44 = vsel %vm505_vm1, %v909_v23, 0.0  ;;  %1668 = vrsqrt.f32 %v2637_v34 }
 0x163   : > { %v670_v10 = vmul.f32 %v650_v5, %v2282_v36  ;;  %v1667_v26 = vpop.eup %1666  ;;  %v875_v46 = vmul.f32 %v2448_v33, %v855_v50  ;;  %v784_v42 = vmul.f32 %v2567_v0, %v783_v38  ;;  %v791_v21 = vmul.f32 %v2624_v8, %v790_v55  ;;  %930 = vadd.xlane.f32.xlu1 %v929_v44 }
 0x164   : > { %v910_v7 = vmul.f32 %v2518_v13, %v2622_v32  ;;  %v856_v63 = vmul.f32 %v768_v51, %v2339_v48  ;;  %v804_v20 = vmul.f32 %v2583_v60, %v803_v19  ;;  %vm806_vm5 = vweird.f32 %v2583_v60 }
 0x165   : > { %v810_v12 = vmul.f32 %v1667_v26, %v2565_v52  ;;  %vm815_vm6 = vweird.f32 %v2565_v52  ;;  %v788_v48 = vsel %vm2661_vm4, %v2567_v0, %v784_v42  ;;  %v792_v57 = vmul.f32 0.5, %v791_v21  ;;  %vm2690_vm8 = vmor %vm805_vm15, %vm806_vm5 }
 0x166   : > { %v932_v24 = vsel %vm505_vm1, %v910_v7, 0.0  ;;  %v908_v35 = vmul.f32 %v2518_v13, %v2646_v43  ;;  %v873_v39 = vmul.f32 %v2448_v33, %v853_v6  ;;  %v877_v4 = vmul.f32 %v2448_v33, %v857_v31 }
 0x167   : > { %v811_v37 = vmul.f32 %v1667_v26, %v810_v12  ;;  %933 = vadd.xlane.f32.xlu2 %v932_v24  ;;  %v2677_v47 = vadd.f32 1e-05, %v670_v10  ;;  %v793_v3 = vsub.f32 1.5, %v792_v57  ;;  %vm796_vm7 = vweird.f32 %v2624_v8 }
 0x168   : > { %v926_v59 = vsel %vm505_vm1, %v908_v35, 0.0  ;;  %v672_v0 = vmul.f32 %v656_v62, %v2282_v36  ;;  %v2682_v15 = vpop.eup %1668  ;;  %v876_v25 = vmul.f32 %v2448_v33, %v856_v63  ;;  %v858_v50 = vmul.f32 %v788_v48, %v2353_v54  ;;  %vm2703_vm10 = vmor %vm795_vm3, %vm796_vm7 }
 0x169   : > { %v812_v11 = vmul.f32 0.5, %v811_v37  ;;  %927 = vadd.xlane.f32.xlu0 %v926_v59  ;;  %1670 = vrsqrt.f32 %v2677_v47  ;;  %v808_v36 = vsel %vm2690_vm8, %v2583_v60, %v804_v20  ;;  %v794_v6 = vmul.f32 %v2624_v8, %v793_v3 }
 0x16a   : > { %vm816_vm9 = vweird.f32 %v1667_v26  ;;  %v830_v54 = vmul.f32 %v2682_v15, %v2637_v34  ;;  %v2707_v1 = vadd.f32 1e-05, %v672_v0  ;;  %v2711_v31 = vadd.f32 %v2474_v56, %v2586_v61 }
 0x16b   : > { %v813_v58 = vsub.f32 1.5, %v812_v11  ;;  %v2714_v60 = vadd.f32 %v2474_v56, %v873_v39  ;;  %v798_v45 = vsel %vm2703_vm10, %v2624_v8, %v794_v6  ;;  %vm835_vm11 = vweird.f32 %v2637_v34  ;;  %vm817_vm12 = vmor %vm815_vm6, %vm816_vm9 }
 0x16c   : > { %v831_v14 = vmul.f32 %v2682_v15, %v830_v54  ;;  %v2722_v16 = vadd.f32 %v2474_v56, %v875_v46  ;;  %v878_v5 = vmul.f32 %v2448_v33, %v858_v50  ;;  %v860_v17 = vmul.f32 %v808_v36, %v2350_v53 }
 0x16d   : > { %v814_v61 = vmul.f32 %v1667_v26, %v813_v58  ;;  %1672 = vrsqrt.f32 %v2707_v1  ;;  %v912_v8 = vmul.f32 %v2518_v13, %v2711_v31  ;;  %v911_v23 = vmul.f32 %v2518_v13, %v2714_v60 }
 0x16e   : > { %v832_v28 = vmul.f32 0.5, %v831_v14  ;;  %v913_v51 = vmul.f32 %v2518_v13, %v2722_v16  ;;  %v859_v53 = vmul.f32 %v798_v45, %v2360_v22  ;;  %v2738_v19 = vadd.f32 %v2474_v56, %v877_v4 }
 0x16f   : > { %v1671_v38 = vpop.eup %1670  ;;  %v818_v55 = vsel %vm817_vm12, %v1667_v26, %v814_v61  ;;  %v2741_v52 = vadd.f32 %v2474_v56, %v876_v25  ;;  %vm836_vm13 = vweird.f32 %v2682_v15  ;;  %v938_v42 = vsel %vm505_vm1, %v912_v8, 0.0 }
 0x170   : > { %v861_v44 = vmul.f32 %v818_v55, %v2374_v2  ;;  %v833_v10 = vsub.f32 1.5, %v832_v28  ;;  %v820_v46 = vmul.f32 %v1671_v38, %v2677_v47  ;;  %v935_v21 = vsel %vm505_vm1, %v911_v23, 0.0  ;;  %939 = vadd.xlane.f32.xlu1 %v938_v42  ;;  %vm837_vm14 = vmor %vm835_vm11, %vm836_vm13 }
 0x171   : > { %v941_v22 = vsel %vm505_vm1, %v913_v51, 0.0  ;;  %v880_v26 = vmul.f32 %v2448_v33, %v860_v17  ;;  %936 = vadd.xlane.f32.xlu0 %v935_v21  ;;  %v879_v2 = vmul.f32 %v2448_v33, %v859_v53  ;;  %v915_v20 = vmul.f32 %v2518_v13, %v2738_v19 }
 0x172   : > { %v834_v7 = vmul.f32 %v2682_v15, %v833_v10  ;;  %v821_v63 = vmul.f32 %v1671_v38, %v820_v46  ;;  %942 = vadd.xlane.f32.xlu2 %v941_v22  ;;  %v914_v12 = vmul.f32 %v2518_v13, %v2741_v52  ;;  %v2759_v62 = vadd.f32 %v2474_v56, %v878_v5  ;;  %v1637_v10 = vld [vmem:[#allocation7 + $0x1] ss:$0 sm:$0xff] }
 0x173   : > { %v1673_v49 = vpop.eup %1672  ;;  %v881_v48 = vmul.f32 %v2448_v33, %v861_v44  ;;  %vm825_vm15 = vweird.f32 %v2677_v47  ;;  %vm826_vm0 = vweird.f32 %v1671_v38  ;;  %v2768_v37 = vadd.f32 %v2474_v56, %v880_v26  ;;  %v2819_v26 = vld [vmem:[#allocation7 + $0x2] ss:$0 sm:$0xff] }
 0x174   : > { %v838_v57 = vsel %vm837_vm14, %v2682_v15, %v834_v7  ;;  %v822_v24 = vmul.f32 0.5, %v821_v63  ;;  %v840_v35 = vmul.f32 %v1673_v49, %v2707_v1  ;;  %v916_v34 = vmul.f32 %v2518_v13, %v2759_v62  ;;  %vm827_vm2 = vmor %vm825_vm15, %vm826_vm0 }
 0x175   : > { %v863_v3 = vmul.f32 %v838_v57, %v2371_v40  ;;  %v947_v59 = vsel %vm505_vm1, %v915_v20, 0.0  ;;  %v944_v0 = vsel %vm505_vm1, %v914_v12, 0.0  ;;  %v2774_v15 = vadd.f32 %v2474_v56, %v879_v2 }
 0x176   : > { %v823_v39 = vsub.f32 1.5, %v822_v24  ;;  %v841_v4 = vmul.f32 %v1673_v49, %v840_v35  ;;  %v950_v50 = vsel %vm505_vm1, %v916_v34, 0.0  ;;  %v2778_v9 = vadd.f32 %v2474_v56, %v881_v48 }
 0x177   : > { %vm846_vm3 = vweird.f32 %v1673_v49  ;;  %v918_v40 = vmul.f32 %v2518_v13, %v2768_v37  ;;  %v883_v6 = vmul.f32 %v2448_v33, %v863_v3  ;;  %v917_v30 = vmul.f32 %v2518_v13, %v2774_v15 }
 0x178   : > { %v824_v25 = vmul.f32 %v1671_v38, %v823_v39  ;;  %v842_v47 = vmul.f32 0.5, %v841_v4  ;;  %948 = vadd.xlane.f32.xlu1 %v947_v59  ;;  %vm845_vm4 = vweird.f32 %v2707_v1  ;;  %v919_v45 = vmul.f32 %v2518_v13, %v2778_v9 }
 0x179   : > { %945 = vadd.xlane.f32.xlu0 %v944_v0  ;;  %vm847_vm5 = vmor %vm845_vm4, %vm846_vm3  ;;  %v956_v17 = vsel %vm505_vm1, %v918_v40, 0.0  ;;  %v2794_v28 = vadd.f32 %v2474_v56, %v883_v6  ;;  %v1035_v46 = vmul.f32 %v1637_v10, %v2646_v43  ;;  %v1034_v42 = vmul.f32 %v1637_v10, %v2516_v41 }
 0x17a   : > { %v828_v11 = vsel %vm827_vm2, %v1671_v38, %v824_v25  ;;  %v843_v36 = vsub.f32 1.5, %v842_v47  ;;  %951 = vadd.xlane.f32.xlu2 %v950_v50  ;;  %v959_v1 = vsel %vm505_vm1, %v919_v45, 0.0  ;;  %v1038_v7 = vmul.f32 %v1637_v10, %v2714_v60 }
 0x17b   : > { %v862_v54 = vmul.f32 %v828_v11, %v2381_v29  ;;  %v953_v29 = vsel %vm505_vm1, %v917_v30, 0.0  ;;  %v921_v51 = vmul.f32 %v2518_v13, %v2794_v28  ;;  %v1053_v21 = vsel %vm505_vm1, %v1035_v46, 0.0 }
 0x17c   : > { %v844_v58 = vmul.f32 %v1673_v49, %v843_v36  ;;  %v1037_v63 = vmul.f32 %v1637_v10, %v2622_v32  ;;  %v1039_v2 = vmul.f32 %v1637_v10, %v2711_v31  ;;  %v1062_v20 = vsel %vm505_vm1, %v1038_v7, 0.0 }
 0x17d   : > { %v882_v14 = vmul.f32 %v2448_v33, %v862_v54  ;;  %v965_v55 = vsel %vm505_vm1, %v921_v51, 0.0  ;;  %v1041_v57 = vmul.f32 %v1637_v10, %v2741_v52  ;;  %v1040_v24 = vmul.f32 %v1637_v10, %v2722_v16 }
 0x17e   : > { %v848_v5 = vsel %vm847_vm5, %v1673_v49, %v844_v58  ;;  %v1059_v12 = vsel %vm505_vm1, %v1037_v63, 0.0  ;;  %v1065_v48 = vsel %vm505_vm1, %v1039_v2, 0.0  ;;  %v1042_v35 = vmul.f32 %v1637_v10, %v2738_v19 }
 0x17f   : > { %v864_v61 = vmul.f32 %v848_v5, %v2390_v27  ;;  %v2797_v8 = vadd.f32 %v2474_v56, %v882_v14  ;;  %v1071_v34 = vsel %vm505_vm1, %v1041_v57, 0.0  ;;  %v1068_v39 = vsel %vm505_vm1, %v1040_v24, 0.0 }
 0x180   : > { %957 = vadd.xlane.f32.xlu1 %v956_v17  ;;  %v1074_v4 = vsel %vm505_vm1, %v1042_v35, 0.0  ;;  %v1044_v3 = vmul.f32 %v1637_v10, %v2774_v15  ;;  %v1043_v59 = vmul.f32 %v1637_v10, %v2759_v62  ;;  %v1045_v0 = vmul.f32 %v1637_v10, %v2768_v37  ;;  %v2894_v35 = vld [vmem:[#allocation7 + $0x3] ss:$0 sm:$0xff] }
 0x181   : > { %v884_v23 = vmul.f32 %v2448_v33, %v864_v61  ;;  %954 = vadd.xlane.f32.xlu0 %v953_v29  ;;  %v920_v27 = vmul.f32 %v2518_v13, %v2797_v8  ;;  %v1047_v11 = vmul.f32 %v1637_v10, %v2797_v8  ;;  %v1046_v36 = vmul.f32 %v1637_v10, %v2778_v9 }
 0x182   : > { %960 = vadd.xlane.f32.xlu2 %v959_v1  ;;  %v1080_v25 = vsel %vm505_vm1, %v1044_v3, 0.0  ;;  %v1077_v47 = vsel %vm505_vm1, %v1043_v59, 0.0  ;;  %v1083_v50 = vsel %vm505_vm1, %v1045_v0, 0.0  ;;  %v1048_v40 = vmul.f32 %v1637_v10, %v2794_v28 }
 0x183   : > { %v2806_v38 = vadd.f32 %v2474_v56, %v884_v23  ;;  %v962_v44 = vsel %vm505_vm1, %v920_v27, 0.0  ;;  %v1036_v56 = vmul.f32 %v1637_v10, %v2616_v18  ;;  %v1089_v6 = vsel %vm505_vm1, %v1047_v11, 0.0 }
 0x184   : > { %v1086_v54 = vsel %vm505_vm1, %v1046_v36, 0.0  ;;  %v1092_v30 = vsel %vm505_vm1, %v1048_v40, 0.0  ;;  %v1150_v58 = vmul.f32 %v2819_v26, %v2516_v41  ;;  %v1151_v14 = vmul.f32 %v2819_v26, %v2646_v43 }
 0x185   : > { %v922_v53 = vmul.f32 %v2518_v13, %v2806_v38  ;;  %v1050_v13 = vsel %vm505_vm1, %v1034_v42, 0.0  ;;  %v1056_v22 = vsel %vm505_vm1, %v1036_v56, 0.0  ;;  %v2825_v49 = vmul.f32 %v2819_v26, %v2806_v38 }
 0x186   : > { %v1049_v45 = vmul.f32 %v1637_v10, %v2806_v38  ;;  %v1166_v5 = vsel %vm505_vm1, %v1150_v58, 0.0  ;;  %v1169_v61 = vsel %vm505_vm1, %v1151_v14, 0.0  ;;  %v1153_v29 = vmul.f32 %v2819_v26, %v2622_v32 }
 0x187   : > { %v968_v33 = vsel %vm505_vm1, %v922_v53, 0.0  ;;  %v1152_v1 = vmul.f32 %v2819_v26, %v2616_v18  ;;  %v1154_v23 = vmul.f32 %v2819_v26, %v2714_v60  ;;  %v1159_v56 = vmul.f32 %v2819_v26, %v2759_v62 }
 0x188   : > { %966 = vadd.xlane.f32.xlu1 %v965_v55  ;;  %v1095_v17 = vsel %vm505_vm1, %v1049_v45, 0.0  ;;  %v1175_v51 = vsel %vm505_vm1, %v1153_v29, 0.0  ;;  %v1156_v55 = vmul.f32 %v2819_v26, %v2722_v16  ;;  %v1266_v59 = vmul.f32 %v2894_v35, %v2516_v41 }
 0x189   : > { %963 = vadd.xlane.f32.xlu0 %v962_v44  ;;  %v1172_v27 = vsel %vm505_vm1, %v1152_v1, 0.0  ;;  %v1178_v53 = vsel %vm505_vm1, %v1154_v23, 0.0  ;;  %v1155_v44 = vmul.f32 %v2819_v26, %v2711_v31  ;;  %v1164_v0 = vmul.f32 %v2819_v26, %v2794_v28 }
 0x18a   : > { %969 = vadd.xlane.f32.xlu2 %v968_v33  ;;  %v1157_v33 = vmul.f32 %v2819_v26, %v2741_v52  ;;  %v1184_v10 = vsel %vm505_vm1, %v1156_v55, 0.0  ;;  %v1269_v40 = vmul.f32 %v2894_v35, %v2622_v32  ;;  %vm992_vm6 = vcmask 130112  }
 0x18b   : > { %v1181_v46 = vsel %vm505_vm1, %v1155_v44, 0.0  ;;  %vm1015_vm7 = vcmask 1041409   ;;  %vm1017_vm8 = vcmask 1042434   ;;  %vm1019_vm9 = vcmask 1043459  }
 0x18c   : > { %v1187_v42 = vsel %vm505_vm1, %v1157_v33, 0.0  ;;  %vm1021_vm10 = vcmask 1044484   ;;  %vm1023_vm11 = vcmask 1045509   ;;  %vm1025_vm12 = vcmask 1046534  }
 0x18d   : > { %vm1027_vm13 = vcmask 1047559   ;;  %vm1030_vm14 = vcmask 130048  }
 0x190   : > { %1054 = vadd.xlane.f32.xlu1 %v1053_v21  ;;  %v1158_v21 = vmul.f32 %v2819_v26, %v2738_v19 }
 0x191   : > { %1051 = vadd.xlane.f32.xlu0 %v1050_v13  ;;  %v1160_v13 = vmul.f32 %v2819_v26, %v2774_v15 }
 0x192   : > { %1057 = vadd.xlane.f32.xlu2 %v1056_v22  ;;  %v1193_v22 = vsel %vm505_vm1, %v1159_v56, 0.0  ;;  %v1190_v7 = vsel %vm505_vm1, %v1158_v21, 0.0  ;;  %v1276_v21 = vmul.f32 %v2894_v35, %v2774_v15 }
 0x193   : > { %v1196_v63 = vsel %vm505_vm1, %v1160_v13, 0.0 }
 0x198   : > { %1063 = vadd.xlane.f32.xlu1 %v1062_v20  ;;  %v1162_v20 = vmul.f32 %v2819_v26, %v2778_v9 }
 0x199   : > { %1060 = vadd.xlane.f32.xlu0 %v1059_v12  ;;  %v1161_v12 = vmul.f32 %v2819_v26, %v2768_v37 }
 0x19a   : > { %1066 = vadd.xlane.f32.xlu2 %v1065_v48  ;;  %v1163_v48 = vmul.f32 %v2819_v26, %v2797_v8  ;;  %v1202_v57 = vsel %vm505_vm1, %v1162_v20, 0.0  ;;  %v1268_v26 = vmul.f32 %v2894_v35, %v2616_v18  ;;  %v1272_v18 = vmul.f32 %v2894_v35, %v2722_v16 }
 0x19b   : > { %v1199_v24 = vsel %vm505_vm1, %v1161_v12, 0.0 }
 0x19c   : > { %v1288_v58 = vsel %vm505_vm1, %v1268_v26, 0.0  ;;  %v1300_v1 = vsel %vm505_vm1, %v1272_v18, 0.0  ;;  %v1280_v18 = vmul.f32 %v2894_v35, %v2794_v28 }
 0x1a0   : > { %1072 = vadd.xlane.f32.xlu1 %v1071_v34  ;;  %v1205_v34 = vsel %vm505_vm1, %v1163_v48, 0.0 }
 0x1a1   : > { %1069 = vadd.xlane.f32.xlu0 %v1068_v39 }
 0x1a2   : > { %1075 = vadd.xlane.f32.xlu2 %v1074_v4 }
 0x1a8   : > { %1081 = vadd.xlane.f32.xlu1 %v1080_v25  ;;  %v1267_v25 = vmul.f32 %v2894_v35, %v2646_v43  ;;  %v1270_v43 = vmul.f32 %v2894_v35, %v2714_v60  ;;  %v1271_v60 = vmul.f32 %v2894_v35, %v2711_v31 }
 0x1a9   : > { %1078 = vadd.xlane.f32.xlu0 %v1077_v47  ;;  %v1282_v47 = vsel %vm505_vm1, %v1266_v59, 0.0 }
 0x1aa   : > { %1084 = vadd.xlane.f32.xlu2 %v1083_v50  ;;  %v1208_v50 = vsel %vm505_vm1, %v1164_v0, 0.0  ;;  %v1285_v11 = vsel %vm505_vm1, %v1267_v25, 0.0  ;;  %v1294_v45 = vsel %vm505_vm1, %v1270_v43, 0.0  ;;  %v1297_v23 = vsel %vm505_vm1, %v1271_v60, 0.0 }
 0x1ab   : > { %v1278_v0 = vmul.f32 %v2894_v35, %v2778_v9 }
 0x1ad   : > { %v1318_v43 = vsel %vm505_vm1, %v1278_v0, 0.0 }
 0x1b0   : > { %1090 = vadd.xlane.f32.xlu1 %v1089_v6 }
 0x1b1   : > { %1087 = vadd.xlane.f32.xlu0 %v1086_v54  ;;  %v987_v54 = vlaneseq }
 0x1b2   : > { %1093 = vadd.xlane.f32.xlu2 %v1092_v30  ;;  %v1291_v30 = vsel %vm505_vm1, %v1269_v40, 0.0  ;;  %v1279_v40 = vmul.f32 %v2894_v35, %v2797_v8 }
 0x1b3   : > { %v2915_v14 = vand.u32 127, %v987_v54 }
 0x1b5   : > { %v2924_v29 = vadd.s32 4294967288, %v2915_v14 }
 0x1b8   : > { %1167 = vadd.xlane.f32.xlu1 %v1166_v5 }
 0x1b9   : > { %1096 = vadd.xlane.f32.xlu0 %v1095_v17 }
 0x1ba   : > { %1170 = vadd.xlane.f32.xlu2 %v1169_v61  ;;  %v1273_v61 = vmul.f32 %v2894_v35, %v2741_v52  ;;  %v1275_v52 = vmul.f32 %v2894_v35, %v2759_v62 }
 0x1c0   : > { %1176 = vadd.xlane.f32.xlu1 %v1175_v51  ;;  %v1303_v51 = vsel %vm505_vm1, %v1273_v61, 0.0  ;;  %v1324_v61 = vsel %vm505_vm1, %v1280_v18, 0.0 }
 0x1c1   : > { %1173 = vadd.xlane.f32.xlu0 %v1172_v27 }
 0x1c2   : > { %1179 = vadd.xlane.f32.xlu2 %v1178_v53 }
 0x1c8   : > { %1185 = vadd.xlane.f32.xlu1 %v1184_v10 }
 0x1c9   : > { %1182 = vadd.xlane.f32.xlu0 %v1181_v46  ;;  %v1274_v46 = vmul.f32 %v2894_v35, %v2738_v19  ;;  %v1309_v19 = vsel %vm505_vm1, %v1275_v52, 0.0 }
 0x1ca   : > { %1188 = vadd.xlane.f32.xlu2 %v1187_v42 }
 0x1cb   : > { %v2884_v2 = vpop.xlane.xlu2 %924  ;;  %v1306_v15 = vsel %vm505_vm1, %v1274_v46, 0.0 }
 0x1cc   : > { %v989_v53 = vperm.slane %v2884_v2, %v2915_v14 }
 0x1d0   : > { %1194 = vadd.xlane.f32.xlu1 %v1193_v22 }
 0x1d1   : > { %1191 = vadd.xlane.f32.xlu0 %v1190_v7 }
 0x1d2   : > { %1197 = vadd.xlane.f32.xlu2 %v1196_v63 }
 0x1d6   : > { %v931_v39 = vpop.xlane.xlu1 %930 }
 0x1d7   : > { %v994_v55 = vperm.slane %v931_v39, %v2915_v14 }
 0x1d8   : > { %1203 = vadd.xlane.f32.xlu1 %v1202_v57  ;;  %v1312_v57 = vsel %vm505_vm1, %v1276_v21, 0.0 }
 0x1d9   : > { %1200 = vadd.xlane.f32.xlu0 %v1199_v24 }
 0x1da   : > { %1206 = vadd.xlane.f32.xlu2 %v1205_v34  ;;  %v934_v4 = vpop.xlane.xlu2 %933 }
 0x1db   : > { %v995_v16 = vperm.slane %v934_v4, %v2924_v29 }
 0x1dc   : > { %v928_v3 = vpop.xlane.xlu0 %927 }
 0x1dd   : > { %v991_v27 = vperm.slane %v928_v3, %v2924_v29  ;;  %v996_v62 = vsel %vm992_vm6, %v995_v16, %v994_v55 }
 0x1df   : > { %v993_v13 = vsel %vm992_vm6, %v991_v27, %v989_v53 }
 0x1e0   : > { %1283 = vadd.xlane.f32.xlu1 %v1282_v47  ;;  %v1016_v12 = vsel %vm1015_vm7, %v996_v62, %v993_v13  ;;  %v1277_v47 = vmul.f32 %v2894_v35, %v2768_v37 }
 0x1e1   : > { %1209 = vadd.xlane.f32.xlu0 %v1208_v50 }
 0x1e2   : > { %1286 = vadd.xlane.f32.xlu2 %v1285_v11  ;;  %v1315_v8 = vsel %vm505_vm1, %v1277_v47, 0.0 }
 0x1e3   : > { %v940_v36 = vpop.xlane.xlu1 %939 }
 0x1e4   : > { %v937_v41 = vpop.xlane.xlu0 %936  ;;  %v998_v42 = vperm.slane %v940_v36, %v2924_v29 }
 0x1e5   : > { %v943_v6 = vpop.xlane.xlu2 %942  ;;  %v997_v31 = vperm.slane %v937_v41, %v2915_v14 }
 0x1e6   : > { %v1000_v22 = vperm.slane %v943_v6, %v2915_v14 }
 0x1e7   : > { %v999_v7 = vsel %vm992_vm6, %v998_v42, %v997_v31 }
 0x1e8   : > { %1292 = vadd.xlane.f32.xlu1 %v1291_v30  ;;  %v1018_v24 = vsel %vm1017_vm8, %v999_v7, %v1016_v12 }
 0x1e9   : > { %1289 = vadd.xlane.f32.xlu0 %v1288_v58 }
 0x1ea   : > { %1295 = vadd.xlane.f32.xlu2 %v1294_v45  ;;  %v1321_v45 = vsel %vm505_vm1, %v1279_v40, 0.0 }
 0x1eb   : > { %v949_v32 = vpop.xlane.xlu1 %948 }
 0x1ec   : > { %v946_v5 = vpop.xlane.xlu0 %945  ;;  %v1003_v48 = vperm.slane %v949_v32, %v2915_v14 }
 0x1ed   : > { %v952_v17 = vpop.xlane.xlu2 %951  ;;  %v1001_v33 = vperm.slane %v946_v5, %v2924_v29 }
 0x1ee   : > { %v1004_v63 = vperm.slane %v952_v17, %v2924_v29  ;;  %v1281_v17 = vmul.f32 %v2894_v35, %v2806_v38 }
 0x1ef   : > { %v1002_v2 = vsel %vm992_vm6, %v1001_v33, %v1000_v22 }
 0x1f0   : > { %1301 = vadd.xlane.f32.xlu1 %v1300_v1  ;;  %v1005_v39 = vsel %vm992_vm6, %v1004_v63, %v1003_v48  ;;  %v1020_v4 = vsel %vm1019_vm9, %v1002_v2, %v1018_v24  ;;  %v1211_v1 = vsel %vm505_vm1, %v2825_v49, 0.0 }
 0x1f1   : > { %1298 = vadd.xlane.f32.xlu0 %v1297_v23  ;;  %v1022_v26 = vsel %vm1021_vm10, %v1005_v39, %v1020_v4  ;;  %v1327_v23 = vsel %vm505_vm1, %v1281_v17, 0.0 }
 0x1f2   : > { %1304 = vadd.xlane.f32.xlu2 %v1303_v51 }
 0x1f3   : > { %v958_v44 = vpop.xlane.xlu1 %957 }
 0x1f4   : > { %v955_v10 = vpop.xlane.xlu0 %954  ;;  %v1007_v34 = vperm.slane %v958_v44, %v2924_v29 }
 0x1f5   : > { %v961_v56 = vpop.xlane.xlu2 %960  ;;  %v1006_v20 = vperm.slane %v955_v10, %v2915_v14 }
 0x1f6   : > { %v1009_v50 = vperm.slane %v961_v56, %v2915_v14 }
 0x1f7   : > { %v1008_v59 = vsel %vm992_vm6, %v1007_v34, %v1006_v20 }
 0x1f8   : > { %1310 = vadd.xlane.f32.xlu1 %v1309_v19  ;;  %v1024_v6 = vsel %vm1023_vm11, %v1008_v59, %v1022_v26 }
 0x1f9   : > { %1307 = vadd.xlane.f32.xlu0 %v1306_v15 }
 0x1fa   : > { %1313 = vadd.xlane.f32.xlu2 %v1312_v57 }
 0x1fb   : > { %v967_v3 = vpop.xlane.xlu1 %966 }
 0x1fc   : > { %v964_v25 = vpop.xlane.xlu0 %963  ;;  %v1012_v41 = vperm.slane %v967_v3, %v2915_v14 }
 0x1fd   : > { %v970_v11 = vpop.xlane.xlu2 %969  ;;  %v1010_v36 = vperm.slane %v964_v25, %v2924_v29 }
 0x1fe   : > { %v1013_v9 = vperm.slane %v970_v11, %v2924_v29 }
 0x1ff   : > { %v1011_v37 = vsel %vm992_vm6, %v1010_v36, %v1009_v50 }
 0x200   : > { %v1014_v54 = vsel %vm992_vm6, %v1013_v9, %v1012_v41  ;;  %v1026_v30 = vsel %vm1025_vm12, %v1011_v37, %v1024_v6  ;;  %1319 = vadd.xlane.f32.xlu1 %v1318_v43 }
 0x201   : > { %v1028_v58 = vsel %vm1027_vm13, %v1014_v54, %v1026_v30  ;;  %1316 = vadd.xlane.f32.xlu0 %v1315_v8 }
 0x202   : > { %1031 = vst.msk [vmem:[%s2980_s28] sm:$0xff] %vm1030_vm14, %v1028_v58  ;;  %1322 = vadd.xlane.f32.xlu2 %v1321_v45 }
 0x203   : > { %v1055_v32 = vpop.xlane.xlu1 %1054 }
 0x204   : > { %v1052_v5 = vpop.xlane.xlu0 %1051  ;;  %v1115_v10 = vperm.slane %v1055_v32, %v2924_v29 }
 0x205   : > { %v1058_v60 = vpop.xlane.xlu2 %1057  ;;  %v1114_v49 = vperm.slane %v1052_v5, %v2915_v14 }
 0x206   : > { %v1117_v35 = vperm.slane %v1058_v60, %v2915_v14 }
 0x207   : > { %v1116_v22 = vsel %vm992_vm6, %v1115_v10, %v1114_v49 }
 0x208   : > { %1325 = vadd.xlane.f32.xlu1 %v1324_v61 }
 0x209   : > { %1212 = vadd.xlane.f32.xlu0 %v1211_v1 }
 0x20a   : > { %1328 = vadd.xlane.f32.xlu2 %v1327_v23 }
 0x20b   : > { %v1064_v51 = vpop.xlane.xlu1 %1063 }
 0x20c   : > { %v1061_v16 = vpop.xlane.xlu0 %1060  ;;  %v1120_v56 = vperm.slane %v1064_v51, %v2915_v14 }
 0x20d   : > { %v1067_v27 = vpop.xlane.xlu2 %1066  ;;  %v1118_v38 = vperm.slane %v1061_v16, %v2924_v29 }
 0x20e   : > { %v1121_v33 = vperm.slane %v1067_v27, %v2924_v29 }
 0x20f   : > { %v1119_v46 = vsel %vm992_vm6, %v1118_v38, %v1117_v35 }
 0x210   : > { %v1122_v19 = vsel %vm992_vm6, %v1121_v33, %v1120_v56  ;;  %v1138_v2 = vsel %vm1015_vm7, %v1119_v46, %v1116_v22 }
 0x211   : > { %v1139_v34 = vsel %vm1017_vm8, %v1122_v19, %v1138_v2 }
 0x213   : > { %v1073_v31 = vpop.xlane.xlu1 %1072 }
 0x214   : > { %v1070_v28 = vpop.xlane.xlu0 %1069  ;;  %v1124_v7 = vperm.slane %v1073_v31, %v2924_v29 }
 0x215   : > { %v1076_v52 = vpop.xlane.xlu2 %1075  ;;  %v1123_v42 = vperm.slane %v1070_v28, %v2915_v14 }
 0x216   : > { %v1126_v20 = vperm.slane %v1076_v52, %v2915_v14 }
 0x217   : > { %v1125_v15 = vsel %vm992_vm6, %v1124_v7, %v1123_v42 }
 0x218   : > { %v1140_v39 = vsel %vm1019_vm9, %v1125_v15, %v1139_v34 }
 0x21b   : > { %v1082_v53 = vpop.xlane.xlu1 %1081 }
 0x21c   : > { %v1079_v55 = vpop.xlane.xlu0 %1078  ;;  %v1129_v24 = vperm.slane %v1082_v53, %v2915_v14 }
 0x21d   : > { %v1085_v44 = vpop.xlane.xlu2 %1084  ;;  %v1127_v62 = vperm.slane %v1079_v55, %v2924_v29 }
 0x21e   : > { %v1130_v12 = vperm.slane %v1085_v44, %v2924_v29 }
 0x21f   : > { %v1128_v48 = vsel %vm992_vm6, %v1127_v62, %v1126_v20 }
 0x220   : > { %v1131_v3 = vsel %vm992_vm6, %v1130_v12, %v1129_v24  ;;  %v1141_v59 = vsel %vm1021_vm10, %v1128_v48, %v1140_v39 }
 0x221   : > { %v1142_v41 = vsel %vm1023_vm11, %v1131_v3, %v1141_v59 }
 0x223   : > { %v1091_v21 = vpop.xlane.xlu1 %1090 }
 0x224   : > { %v1088_v13 = vpop.xlane.xlu0 %1087  ;;  %v1133_v4 = vperm.slane %v1091_v21, %v2924_v29 }
 0x225   : > { %v1094_v63 = vpop.xlane.xlu2 %1093  ;;  %v1132_v57 = vperm.slane %v1088_v13, %v2915_v14 }
 0x226   : > { %v1135_v50 = vperm.slane %v1094_v63, %v2915_v14 }
 0x227   : > { %v1134_v25 = vsel %vm992_vm6, %v1133_v4, %v1132_v57 }
 0x228   : > { %v1143_v9 = vsel %vm1025_vm12, %v1134_v25, %v1142_v41 }
 0x22b   : > { %v1168_v0 = vpop.xlane.xlu1 %1167 }
 0x22c   : > { %v1097_v47 = vpop.xlane.xlu0 %1096  ;;  %v1230_v40 = vperm.slane %v1168_v0, %v2915_v14 }
 0x22d   : > { %v1171_v11 = vpop.xlane.xlu2 %1170  ;;  %v1136_v36 = vperm.slane %v1097_v47, %v2924_v29 }
 0x22e   : > { %v1231_v26 = vperm.slane %v1171_v11, %v2924_v29 }
 0x22f   : > { %v1137_v6 = vsel %vm992_vm6, %v1136_v36, %v1135_v50 }
 0x230   : > { %v1232_v37 = vsel %vm992_vm6, %v1231_v26, %v1230_v40  ;;  %v1144_v43 = vsel %vm1027_vm13, %v1137_v6, %v1143_v9 }
 0x231   : > { %1518 = vst.msk [vmem:[%s2980_s28 + $0x8] sm:$0xff] %vm1030_vm14, %v1144_v43 }
 0x233   : > { %v1177_v54 = vpop.xlane.xlu1 %1176 }
 0x234   : > { %v1174_v30 = vpop.xlane.xlu0 %1173  ;;  %v1234_v8 = vperm.slane %v1177_v54, %v2924_v29 }
 0x235   : > { %v1180_v58 = vpop.xlane.xlu2 %1179  ;;  %v1233_v45 = vperm.slane %v1174_v30, %v2915_v14 }
 0x236   : > { %v1236_v17 = vperm.slane %v1180_v58, %v2915_v14 }
 0x237   : > { %v1235_v32 = vsel %vm992_vm6, %v1234_v8, %v1233_v45 }
 0x238   : > { %v1254_v18 = vsel %vm1015_vm7, %v1235_v32, %v1232_v37 }
 0x23b   : > { %v1186_v5 = vpop.xlane.xlu1 %1185 }
 0x23c   : > { %v1183_v60 = vpop.xlane.xlu0 %1182  ;;  %v1239_v15 = vperm.slane %v1186_v5, %v2915_v14 }
 0x23d   : > { %v1189_v61 = vpop.xlane.xlu2 %1188  ;;  %v1237_v1 = vperm.slane %v1183_v60, %v2924_v29 }
 0x23e   : > { %v1240_v7 = vperm.slane %v1189_v61, %v2924_v29 }
 0x23f   : > { %v1238_v23 = vsel %vm992_vm6, %v1237_v1, %v1236_v17 }
 0x240   : > { %v1255_v51 = vsel %vm1017_vm8, %v1238_v23, %v1254_v18  ;;  %v1241_v25 = vsel %vm992_vm6, %v1240_v7, %v1239_v15 }
 0x241   : > { %v1256_v45 = vsel %vm1019_vm9, %v1241_v25, %v1255_v51 }
 0x243   : > { %v1195_v16 = vpop.xlane.xlu1 %1194 }
 0x244   : > { %v1192_v27 = vpop.xlane.xlu0 %1191  ;;  %v1243_v39 = vperm.slane %v1195_v16, %v2924_v29 }
 0x245   : > { %v1198_v31 = vpop.xlane.xlu2 %1197  ;;  %v1242_v2 = vperm.slane %v1192_v27, %v2915_v14 }
 0x246   : > { %v1245_v36 = vperm.slane %v1198_v31, %v2915_v14 }
 0x247   : > { %v1244_v40 = vsel %vm992_vm6, %v1243_v39, %v1242_v2 }
 0x248   : > { %v1257_v18 = vsel %vm1021_vm10, %v1244_v40, %v1256_v45 }
 0x24b   : > { %v1204_v28 = vpop.xlane.xlu1 %1203 }
 0x24c   : > { %v1201_v52 = vpop.xlane.xlu0 %1200  ;;  %v1248_v58 = vperm.slane %v1204_v28, %v2915_v14 }
 0x24d   : > { %v1207_v53 = vpop.xlane.xlu2 %1206  ;;  %v1246_v4 = vperm.slane %v1201_v52, %v2924_v29 }
 0x24e   : > { %v1249_v9 = vperm.slane %v1207_v53, %v2924_v29 }
 0x24f   : > { %v1247_v54 = vsel %vm992_vm6, %v1246_v4, %v1245_v36 }
 0x250   : > { %v1250_v17 = vsel %vm992_vm6, %v1249_v9, %v1248_v58  ;;  %v1258_v61 = vsel %vm1023_vm11, %v1247_v54, %v1257_v18 }
 0x253   : > { %v1284_v55 = vpop.xlane.xlu1 %1283 }
 0x254   : > { %v3036_v44 = vpop.xlane.xlu0 %1209  ;;  %v1346_v12 = vperm.slane %v1284_v55, %v2915_v14 }
 0x255   : > { %v1287_v38 = vpop.xlane.xlu2 %1286  ;;  %v1251_v16 = vperm.slane %v3036_v44, %v2915_v14  ;;  %v1259_v44 = vsel %vm1025_vm12, %v1250_v17, %v1258_v61 }
 0x256   : > { %v1347_v63 = vperm.slane %v1287_v38, %v2924_v29 }
 0x258   : > { %v1348_v47 = vsel %vm992_vm6, %v1347_v63, %v1346_v12 }
 0x25b   : > { %v1293_v35 = vpop.xlane.xlu1 %1292 }
 0x25c   : > { %v1290_v49 = vpop.xlane.xlu0 %1289  ;;  %v1350_v19 = vperm.slane %v1293_v35, %v2924_v29 }
 0x25d   : > { %v1296_v33 = vpop.xlane.xlu2 %1295  ;;  %v1349_v13 = vperm.slane %v1290_v49, %v2915_v14 }
 0x25e   : > { %v1352_v20 = vperm.slane %v1296_v33, %v2915_v14 }
 0x25f   : > { %v1351_v48 = vsel %vm992_vm6, %v1350_v19, %v1349_v13 }
 0x260   : > { %v1370_v41 = vsel %vm1015_vm7, %v1351_v48, %v1348_v47 }
 0x263   : > { %v1302_v10 = vpop.xlane.xlu1 %1301 }
 0x264   : > { %v1299_v46 = vpop.xlane.xlu0 %1298  ;;  %v1355_v50 = vperm.slane %v1302_v10, %v2915_v14 }
 0x265   : > { %v1305_v42 = vpop.xlane.xlu2 %1304  ;;  %v1353_v22 = vperm.slane %v1299_v46, %v2924_v29 }
 0x266   : > { %v1356_v57 = vperm.slane %v1305_v42, %v2924_v29 }
 0x267   : > { %v1354_v3 = vsel %vm992_vm6, %v1353_v22, %v1352_v20 }
 0x268   : > { %v1357_v6 = vsel %vm992_vm6, %v1356_v57, %v1355_v50  ;;  %v1371_v37 = vsel %vm1017_vm8, %v1354_v3, %v1370_v41 }
 0x269   : > { %v1372_v60 = vsel %vm1019_vm9, %v1357_v6, %v1371_v37 }
 0x26b   : > { %v1311_v56 = vpop.xlane.xlu1 %1310 }
 0x26c   : > { %v1308_v21 = vpop.xlane.xlu0 %1307  ;;  %v1359_v26 = vperm.slane %v1311_v56, %v2924_v29 }
 0x26d   : > { %v1314_v62 = vpop.xlane.xlu2 %1313  ;;  %v1358_v59 = vperm.slane %v1308_v21, %v2915_v14 }
 0x26e   : > { %v1361_v43 = vperm.slane %v1314_v62, %v2915_v14 }
 0x26f   : > { %v1360_v30 = vsel %vm992_vm6, %v1359_v26, %v1358_v59 }
 0x270   : > { %v1373_v1 = vsel %vm1021_vm10, %v1360_v30, %v1372_v60 }
 0x273   : > { %v1320_v24 = vpop.xlane.xlu1 %1319 }
 0x274   : > { %v1317_v34 = vpop.xlane.xlu0 %1316  ;;  %v1364_v5 = vperm.slane %v1320_v24, %v2915_v14 }
 0x275   : > { %v1323_v0 = vpop.xlane.xlu2 %1322  ;;  %v1362_v11 = vperm.slane %v1317_v34, %v2924_v29 }
 0x276   : > { %v1365_v8 = vperm.slane %v1323_v0, %v2924_v29 }
 0x277   : > { %v1363_v32 = vsel %vm992_vm6, %v1362_v11, %v1361_v43 }
 0x278   : > { %v1366_v27 = vsel %vm992_vm6, %v1365_v8, %v1364_v5  ;;  %v1374_v31 = vsel %vm1023_vm11, %v1363_v32, %v1373_v1 }
 0x279   : > { %v1375_v49 = vsel %vm1025_vm12, %v1366_v27, %v1374_v31 }
 0x27b   : > { %v1326_v23 = vpop.xlane.xlu1 %1325 }
 0x27c   : > { %v1213_v51 = vpop.xlane.xlu0 %1212  ;;  %v1367_v53 = vperm.slane %v1326_v23, %v2915_v14 }
 0x27d   : > { %v1329_v28 = vpop.xlane.xlu2 %1328  ;;  %v1252_v52 = vperm.slane %v1213_v51, %v2924_v29 }
 0x27e   : > { %v1368_v55 = vperm.slane %v1329_v28, %v2924_v29 }
 0x27f   : > { %v1253_v38 = vsel %vm992_vm6, %v1252_v52, %v1251_v16 }
 0x280   : > { %v1369_v35 = vsel %vm992_vm6, %v1368_v55, %v1367_v53  ;;  %v1260_v33 = vsel %vm1027_vm13, %v1253_v38, %v1259_v44 }
 0x281   : > { %v1376_v10 = vsel %vm1027_vm13, %v1369_v35, %v1375_v49  ;;  %1519 = vst.msk [vmem:[%s2980_s28 + $0x10] sm:$0xff] %vm1030_vm14, %v1260_v33 }
 0x282   : > { %1520 = vst.msk [vmem:[%s2980_s28 + $0x18] sm:$0xff] %vm1030_vm14, %v1376_v10 }
 0x283   : > { %1791 = shalt.err (!%p1788_p0)
}
 0x284   : > { %s1876_s1 = smov 128   ;;  %s1877_s30 = smov 256  }
 0x285   : > { %s1878_s15 = smov 8  }
 0x286   : > { %1536 = dma.vmem_to_hbm [thread:$0]  (%p1966_p8), %s3088_s27, 512, %s1397_s7, %s1381_s10, %s1876_s1, %s1877_s30, %s1878_s15  }
 0x287 PF: > { %s3194_s20 = sld [smem:[#allocation14_spill]] }
 0x288   : > { %s3195_s26 = sld [smem:[#allocation12_spill]] }
 0x28d   : > { %p1558_p1 = scmp.ge.s32.totalorder %s3194_s20, 2 }
 0x28e   : > { %s1411_s8 = sand.u32 1, %s3195_s26  }
 0x28f   : > { %p1550_p2 = pnand %p1558_p1, %p1970_p9  ;;  %s1412_s19 = scalar_lea.sflag [#allocation4], %s1411_s8 }
 0x291   : > { %p1551_p4 = pneg %p1550_p2 }
 0x293   : > { %1833 = dma.done.wait (%p1551_p4), %s1412_s19, 512  }
 0x294   : > { %1835 = vsyncadd (%p1551_p4), %s1412_s19, 4294966784  ;;  %s21_s14 = sadd.s32 1, %s3194_s20   ;;  %s3197_s18 = sld [smem:[#allocation13_spill]] }
 0x295   : > { %p18_p5 = scmp.ge.s32.totalorder %s21_s14, 6   ;;  %s3198_s20 = sld [smem:[#allocation16_spill]] }
 0x296   : > { %s3199_s15 = smov %s1842_s16  ;;  %s3200_s16 = smov %s1846_s17 }
 0x297   : > { %s3201_s17 = smov %s2017_s22  ;;  %s3202_s19 = smov %s1862_s21 }
 0x298   : > { %s3203_s21 = smov %s3210_s6  ;;  %s3204_s22 = smov %s21_s14 }
 0x299   :  { %20 = sbr.rel (!%p18_p5) target bundleno = 11 (0xb), region = 92 }
 0x29e   :  { %1418 = vsyncpa [#allocation3], 1 }
 0x29f   :  { %1420 = vsyncpa [#allocation3 + $0x1], 1 }
 0x2a0   :  { %1421 = vsyncpa [#allocation6], 1 }
 0x2a1   :  { %1422 = vsyncpa [#allocation4], 1 }
 0x2a2   :  { %1424 = vsyncpa [#allocation4 + $0x1], 1 }

</bundles_post_ra>
